<compile_context>
chip_gen: v6e
topology: v6e:2x2x1
jax: 0.10.0
libtpu: 0.0.40
codegen_flags: <defaults>
</compile_context>

<pallas_src>
import functools

import jax
import jax.numpy as jnp
from jax.experimental import pallas as pl
from jax.experimental.pallas import tpu as pltpu


def _generator_kernel(x_ref, w1_ref, b1_ref, w2_ref, b2_ref, w3_ref, b3_ref, o_ref):
    # Cast activations to the weights' compute dtype in-kernel (single f32 read
    # from HBM, VPU cast hides under the layer-1 matmul).
    x = x_ref[...].astype(w1_ref.dtype)
    # Layer 1: Linear + ReLU.  MXU matmul, f32 accumulation; bias-add / ReLU in
    # f32, downcast fused so only a compute-dtype temp materializes.
    h1 = jnp.dot(x, w1_ref[...], preferred_element_type=jnp.float32)
    h1 = jnp.maximum(h1 + b1_ref[...], 0.0).astype(w2_ref.dtype)
    # Layer 2: Linear + ReLU.
    h2 = jnp.dot(h1, w2_ref[...], preferred_element_type=jnp.float32)
    h2 = jnp.maximum(h2 + b2_ref[...], 0.0).astype(w3_ref.dtype)
    # Layer 3: Linear + Tanh (tanh runs on the EUP, off the MXU critical path).
    h3 = jnp.dot(h2, w3_ref[...], preferred_element_type=jnp.float32)
    o_ref[...] = jnp.tanh(h3 + b3_ref[...]).astype(o_ref.dtype)


def _estimate_vmem_bytes(bt, in_dim, hid1, hid2, out_dim, w_itemsize, act_itemsize):
    """Rough resident-VMEM footprint for one grid step."""
    weights = (in_dim * hid1 + hid1 * hid2 + hid2 * out_dim) * w_itemsize  # single-buffered
    biases = (hid1 + hid2 + out_dim) * 4
    x_tiles = 2 * bt * in_dim * act_itemsize       # double-buffered input tiles
    o_tiles = 2 * bt * out_dim * act_itemsize      # double-buffered output tiles
    temps = bt * (hid1 + hid2 + out_dim) * 4       # f32 intermediates (upper bound)
    return weights + biases + x_tiles + o_tiles + temps


@functools.partial(jax.jit, static_argnames=("batch_tile",))
def generator_forward(noise, w1, b1, w2, b2, w3, b3, *, batch_tile=None):
    """Fused 3-layer MLP forward.

    noise: (B, input_dim) float32.  Weights are (in_features, out_features) and
    should already be in the desired MXU compute dtype (f32 for bit-faithful
    checking, bf16 for the fast path) -- cast them ONCE outside this function
    (see cast_params_for_mxu).  Biases stay f32.

    batch_tile=None -> single grid step (best on single-TC v5e/v6e for small/
    medium B).  On v7x pass batch_tile = B // 4 (multiple of 128) so each
    TensorCore gets >= 2 steps and the input pipeline actually overlaps.
    """
    B, in_dim = noise.shape
    hid1 = w1.shape[1]
    hid2 = w2.shape[1]
    out_dim = w3.shape[1]

    bt = B if batch_tile is None else min(batch_tile, B)
    assert B % bt == 0, "batch must be divisible by the (clamped) batch_tile"
    assert bt == B or bt % 128 == 0, "batch_tile must be a multiple of 128 (MXU M granularity)"

    # Biases: f32, (1, F) so they broadcast over the batch tile.  (Tiny; the
    # reshape/cast is negligible and a no-op for f32 inputs.)
    b1_2d = b1.reshape(1, hid1).astype(jnp.float32)
    b2_2d = b2.reshape(1, hid2).astype(jnp.float32)
    b3_2d = b3.reshape(1, out_dim).astype(jnp.float32)

    # Explicit VMEM budget (capped at 64 MiB so it is also valid on v7x).
    est = _estimate_vmem_bytes(
        bt, in_dim, hid1, hid2, out_dim,
        jnp.dtype(w1.dtype).itemsize, jnp.dtype(noise.dtype).itemsize)
    vmem_limit = int(min(64 * 1024 * 1024, 2 * est + 8 * 1024 * 1024))
    # TODO(synk): if real generator sizes push resident weights past the v7x
    # budget, add a reduction grid axis (tile hid/out, marked "arbitrary" last)
    # instead of full-array resident weight blocks.

    def const_spec(shape):
        # Same block every grid step -> nothing to prefetch; single-buffer it.
        return pl.BlockSpec(shape, lambda i: (0, 0), pipeline_mode=pl.Buffered(1))

    grid = (B // bt,)
    return pl.pallas_call(
        _generator_kernel,
        out_shape=jax.ShapeDtypeStruct((B, out_dim), noise.dtype),
        grid_spec=pltpu.PrefetchScalarGridSpec(
            num_scalar_prefetch=0,
            grid=grid,
            in_specs=[
                # activations: tiled along batch (double-buffered by default)
                pl.BlockSpec((bt, in_dim), lambda i: (i, 0)),
                # weights / biases: full arrays, resident in VMEM, single-buffered
                const_spec((in_dim, hid1)),
                const_spec((1, hid1)),
                const_spec((hid1, hid2)),
                const_spec((1, hid2)),
                const_spec((hid2, out_dim)),
                const_spec((1, out_dim)),
            ],
            out_specs=pl.BlockSpec((bt, out_dim), lambda i: (i, 0)),
        ),
        compiler_params=pltpu.CompilerParams(
            # Batch steps are independent -> megacore-shardable on v7x.
            dimension_semantics=("parallel",),
            vmem_limit_bytes=vmem_limit,
        ),
    )(noise, w1, b1_2d, w2, b2_2d, w3, b3_2d)


def init_generator_params(key, input_dim, hidden_dim, output_dim):
    """Deterministic init mimicking torch.nn.Linear default U(-1/sqrt(fan_in), 1/sqrt(fan_in)).
    Weights are stored as (in_features, out_features)."""
    ks = jax.random.split(key, 6)

    def linear(kw, kb, fan_in, fan_out):
        bound = 1.0 / jnp.sqrt(jnp.float32(fan_in))
        w = jax.random.uniform(kw, (fan_in, fan_out), jnp.float32, -bound, bound)
        b = jax.random.uniform(kb, (fan_out,), jnp.float32, -bound, bound)
        return w, b

    w1, b1 = linear(ks[0], ks[1], input_dim, hidden_dim)
    w2, b2 = linear(ks[2], ks[3], hidden_dim, hidden_dim)
    w3, b3 = linear(ks[4], ks[5], hidden_dim, output_dim)
    return w1, b1, w2, b2, w3, b3


def cast_params_for_mxu(params, dtype=jnp.bfloat16):
    """One-time weight cast to the MXU compute dtype; biases stay f32."""
    w1, b1, w2, b2, w3, b3 = params
    return (w1.astype(dtype), b1, w2.astype(dtype), b2, w3.astype(dtype), b3)


def generator_ref(noise, w1, b1, w2, b2, w3, b3):
    h = jnp.maximum(noise @ w1 + b1, 0.0)
    h = jnp.maximum(h @ w2 + b2, 0.0)
    return jnp.tanh(h @ w3 + b3)


if __name__ == "__main__":
    # Small shapes consistent with the module's MLP structure
    # (Linear->ReLU->Linear->ReLU->Linear->Tanh), scaled down for the demo and
    # chosen as lane-full multiples of 128.
    batch, input_dim, hidden_dim, output_dim = 256, 128, 256, 256

    key = jax.random.PRNGKey(0)
    k_noise, k_params = jax.random.split(key)
    noise = jax.random.normal(k_noise, (batch, input_dim), dtype=jnp.float32)
    params_f32 = init_generator_params(k_params, input_dim, hidden_dim, output_dim)

    ref = generator_ref(noise, *params_f32)

    # f32 MXU path (default single grid step -> best on single-TC v5e/v6e):
    out_f32 = jax.block_until_ready(generator_forward(noise, *params_f32))
    assert out_f32.shape == (batch, output_dim)
    assert jnp.allclose(out_f32, ref, atol=1e-5, rtol=1e-5), "f32 mismatch vs reference"

    # bf16-operand MXU fast path: weights pre-cast ONCE outside the jit; the
    # noise stays f32 and is cast in-kernel (f32 accumulation throughout).
    params_bf16 = cast_params_for_mxu(params_f32, jnp.bfloat16)
    out_bf16 = jax.block_until_ready(generator_forward(noise, *params_bf16))
    assert out_bf16.shape == (batch, output_dim)
    assert jnp.allclose(out_bf16, ref, atol=3e-2, rtol=3e-2), "bf16 mismatch vs reference"

    # Batch-tiled pipeline path (what you'd use on v7x with larger B): bt=128.
    out_tiled = jax.block_until_ready(
        generator_forward(noise, *params_bf16, batch_tile=128))
    assert out_tiled.shape == (batch, output_dim)
    assert jnp.allclose(out_tiled, ref, atol=3e-2, rtol=3e-2), "tiled mismatch vs reference"

    print("KERNEL_OK")
</pallas_src>

<mosaic_0001>
module attributes {stable_mosaic.version = 11 : i64} {
  func.func @_generator_kernel(%arg0: i32, %arg1: memref<256x128xf32, #tpu.memory_space<vmem>>, %arg2: memref<128x256xf32, #tpu.memory_space<vmem>>, %arg3: memref<1x256xf32, #tpu.memory_space<vmem>>, %arg4: memref<256x256xf32, #tpu.memory_space<vmem>>, %arg5: memref<1x256xf32, #tpu.memory_space<vmem>>, %arg6: memref<256x256xf32, #tpu.memory_space<vmem>>, %arg7: memref<1x256xf32, #tpu.memory_space<vmem>>, %arg8: memref<256x256xf32, #tpu.memory_space<vmem>>) attributes {dimension_semantics = [#tpu.dimension_semantics<parallel>], iteration_bounds = array<i64: 1>, scalar_prefetch = 0 : i64, scratch_operands = 0 : i64, tpu.core_type = #tpu.core_type<tc>, window_params = [{transform_indices = @transform_0, window_bounds = array<i64: 256, 128>}, {pipeline_mode = #tpu.pipeline_mode<synchronous>, transform_indices = @transform_1, window_bounds = array<i64: 128, 256>}, {pipeline_mode = #tpu.pipeline_mode<synchronous>, transform_indices = @transform_2, window_bounds = array<i64: 1, 256>}, {pipeline_mode = #tpu.pipeline_mode<synchronous>, transform_indices = @transform_3, window_bounds = array<i64: 256, 256>}, {pipeline_mode = #tpu.pipeline_mode<synchronous>, transform_indices = @transform_4, window_bounds = array<i64: 1, 256>}, {pipeline_mode = #tpu.pipeline_mode<synchronous>, transform_indices = @transform_5, window_bounds = array<i64: 256, 256>}, {pipeline_mode = #tpu.pipeline_mode<synchronous>, transform_indices = @transform_6, window_bounds = array<i64: 1, 256>}, {transform_indices = @transform_7, window_bounds = array<i64: 256, 256>}]} {
    %c0 = arith.constant 0 : index
    %c0_0 = arith.constant 0 : index
    %0 = vector.load %arg1[%c0, %c0_0] : memref<256x128xf32, #tpu.memory_space<vmem>>, vector<256x128xf32>
    %c0_1 = arith.constant 0 : index
    %c0_2 = arith.constant 0 : index
    %1 = vector.load %arg2[%c0_1, %c0_2] : memref<128x256xf32, #tpu.memory_space<vmem>>, vector<128x256xf32>
    %cst = arith.constant dense<0.000000e+00> : vector<256x256xf32>
    %2 = tpu.matmul %0, %1, %cst {dimension_numbers = #tpu.dot_dimension_numbers<[1], [0], [0], [1], [0, 0, 1, 1], [], []>} : vector<256x128xf32>, vector<128x256xf32>, vector<256x256xf32> -> vector<256x256xf32>
    %c0_3 = arith.constant 0 : index
    %c0_4 = arith.constant 0 : index
    %3 = vector.load %arg3[%c0_3, %c0_4] : memref<1x256xf32, #tpu.memory_space<vmem>>, vector<1x256xf32>
    %4 = vector.broadcast %3 : vector<1x256xf32> to vector<256x256xf32>
    %5 = arith.addf %2, %4 : vector<256x256xf32>
    %cst_5 = arith.constant 0.000000e+00 : f32
    %6 = vector.broadcast %cst_5 : f32 to vector<256x256xf32>
    %7 = arith.maximumf %5, %6 : vector<256x256xf32>
    %c0_6 = arith.constant 0 : index
    %c0_7 = arith.constant 0 : index
    %8 = vector.load %arg4[%c0_6, %c0_7] : memref<256x256xf32, #tpu.memory_space<vmem>>, vector<256x256xf32>
    %cst_8 = arith.constant dense<0.000000e+00> : vector<256x256xf32>
    %9 = tpu.matmul %7, %8, %cst_8 {dimension_numbers = #tpu.dot_dimension_numbers<[1], [0], [0], [1], [0, 0, 1, 1], [], []>} : vector<256x256xf32>, vector<256x256xf32>, vector<256x256xf32> -> vector<256x256xf32>
    %c0_9 = arith.constant 0 : index
    %c0_10 = arith.constant 0 : index
    %10 = vector.load %arg5[%c0_9, %c0_10] : memref<1x256xf32, #tpu.memory_space<vmem>>, vector<1x256xf32>
    %11 = vector.broadcast %10 : vector<1x256xf32> to vector<256x256xf32>
    %12 = arith.addf %9, %11 : vector<256x256xf32>
    %cst_11 = arith.constant 0.000000e+00 : f32
    %13 = vector.broadcast %cst_11 : f32 to vector<256x256xf32>
    %14 = arith.maximumf %12, %13 : vector<256x256xf32>
    %c0_12 = arith.constant 0 : index
    %c0_13 = arith.constant 0 : index
    %15 = vector.load %arg6[%c0_12, %c0_13] : memref<256x256xf32, #tpu.memory_space<vmem>>, vector<256x256xf32>
    %cst_14 = arith.constant dense<0.000000e+00> : vector<256x256xf32>
    %16 = tpu.matmul %14, %15, %cst_14 {dimension_numbers = #tpu.dot_dimension_numbers<[1], [0], [0], [1], [0, 0, 1, 1], [], []>} : vector<256x256xf32>, vector<256x256xf32>, vector<256x256xf32> -> vector<256x256xf32>
    %c0_15 = arith.constant 0 : index
    %c0_16 = arith.constant 0 : index
    %17 = vector.load %arg7[%c0_15, %c0_16] : memref<1x256xf32, #tpu.memory_space<vmem>>, vector<1x256xf32>
    %18 = vector.broadcast %17 : vector<1x256xf32> to vector<256x256xf32>
    %19 = arith.addf %16, %18 : vector<256x256xf32>
    %20 = math.tanh %19 : vector<256x256xf32>
    %c0_17 = arith.constant 0 : index
    %c0_18 = arith.constant 0 : index
    %21 = vector.load %arg8[%c0_17, %c0_18] : memref<256x256xf32, #tpu.memory_space<vmem>>, vector<256x256xf32>
    tpu.vector_store %arg8[%c0_17, %c0_18], %20 {strides = array<i32>} : memref<256x256xf32, #tpu.memory_space<vmem>>, vector<256x256xf32>,
    return
  }
  func.func @transform_0(%arg0: i32) -> (i32, i32) {
    %c0_i32 = arith.constant 0 : i32
    %c0_i32_0 = arith.constant 0 : i32
    return %arg0, %c0_i32 : i32, i32
  }
  func.func @transform_1(%arg0: i32) -> (i32, i32) {
    %c0_i32 = arith.constant 0 : i32
    %c0_i32_0 = arith.constant 0 : i32
    %c0_i32_1 = arith.constant 0 : i32
    return %c0_i32, %c0_i32_0 : i32, i32
  }
  func.func @transform_2(%arg0: i32) -> (i32, i32) {
    %c0_i32 = arith.constant 0 : i32
    %c0_i32_0 = arith.constant 0 : i32
    %c0_i32_1 = arith.constant 0 : i32
    return %c0_i32, %c0_i32_0 : i32, i32
  }
  func.func @transform_3(%arg0: i32) -> (i32, i32) {
    %c0_i32 = arith.constant 0 : i32
    %c0_i32_0 = arith.constant 0 : i32
    %c0_i32_1 = arith.constant 0 : i32
    return %c0_i32, %c0_i32_0 : i32, i32
  }
  func.func @transform_4(%arg0: i32) -> (i32, i32) {
    %c0_i32 = arith.constant 0 : i32
    %c0_i32_0 = arith.constant 0 : i32
    %c0_i32_1 = arith.constant 0 : i32
    return %c0_i32, %c0_i32_0 : i32, i32
  }
  func.func @transform_5(%arg0: i32) -> (i32, i32) {
    %c0_i32 = arith.constant 0 : i32
    %c0_i32_0 = arith.constant 0 : i32
    %c0_i32_1 = arith.constant 0 : i32
    return %c0_i32, %c0_i32_0 : i32, i32
  }
  func.func @transform_6(%arg0: i32) -> (i32, i32) {
    %c0_i32 = arith.constant 0 : i32
    %c0_i32_0 = arith.constant 0 : i32
    %c0_i32_1 = arith.constant 0 : i32
    return %c0_i32, %c0_i32_0 : i32, i32
  }
  func.func @transform_7(%arg0: i32) -> (i32, i32) {
    %c0_i32 = arith.constant 0 : i32
    %c0_i32_0 = arith.constant 0 : i32
    return %arg0, %c0_i32 : i32, i32
  }
}

</mosaic_0001>

<bundles_post_ra>
// kernel: generator_forward.1
= control target key start
LH: loop header
LB: loop body
LE: loop exit
PB: predicated region body
PF: predicated region fallthrough
CT: control target
= control target key end

     0   :  { %12 = vsyncpa [#allocation3], 0  ;;  %s2026_s0 = inlined_call_operand.hbm [shape: f32[256,128], index: 0, kind: input, shape index: {}]   ;;  %s2027_s1 = inlined_call_operand.hbm [shape: f32[128,256], index: 1, kind: input, shape index: {}]   ;;  %s2028_s2 = inlined_call_operand.vmem [shape: f32[1,256], index: 2, kind: input, shape index: {}]   ;;  %s2029_s3 = inlined_call_operand.hbm [shape: f32[256,256], index: 3, kind: input, shape index: {}]   ;;  %s2030_s4 = inlined_call_operand.vmem [shape: f32[1,256], index: 4, kind: input, shape index: {}]   ;;  %s2031_s5 = inlined_call_operand.hbm [shape: f32[256,256], index: 5, kind: input, shape index: {}]   ;;  %s2032_s6 = inlined_call_operand.vmem [shape: f32[1,256], index: 6, kind: input, shape index: {}]   ;;  %s2033_s7 = inlined_call_operand.hbm [shape: f32[256,256], index: 7, kind: output, shape index: {}]  }
   0x1   :  { %13 = vsyncpa [#allocation6], 0 }
   0x2   :  { %14 = vsyncpa [#allocation9], 0 }
   0x3   :  { %15 = vsyncpa [#allocation4], 0  ;;  %s1634_s24 = smov [#allocation5]  }
   0x4   :  { %s33_s25 = sshll.u32 %s1634_s24, 4  ;;  %s34_s25 = int_to_ptr.vmem [resolvable:$true] %s33_s25 }
   0x5   :  { %s1534_s26 = scalar_lea.vmem %s34_s25, 4096  ;;  %p1539_p1 = scmp.lt.s32.totalorder %s34_s25, %s34_s25 }
   0x6   :  { %p1535_p0 = scmp.ne.s32.totalorder %s34_s25, %s1534_s26  ;;  %p1540_p2 = scmp.lt.s32.totalorder %s1534_s26, %s1534_s26 }
   0x8   :  { %p1541_p3 = por %p1540_p2, %p1539_p1 }
   0xa   :  { %p1542_p4 = pnand %p1541_p3, %p1535_p0 }
   0xc   :  { %1545 = shalt.err (!%p1542_p4)
}
   0xd   :  { %s1635_s27 = smov 256   ;;  %s1636_s28 = smov 16  }
   0xe   :  { %39 = dma.hbm_to_vmem [thread:$0]  %s2027_s1, 4096, %s34_s25, [#allocation6], %s1635_s27, %s1635_s27, %s1636_s28  }
   0xf   :  { %s1637_s8 = smov [#allocation2]  }
  0x10   :  { %s21_s9 = sshll.u32 %s1637_s8, 4  ;;  %s22_s9 = int_to_ptr.vmem [resolvable:$true] %s21_s9 }
  0x11   :  { %s1554_s10 = scalar_lea.vmem %s22_s9, 4096  ;;  %p1559_p6 = scmp.lt.s32.totalorder %s22_s9, %s22_s9 }
  0x12   :  { %p1555_p5 = scmp.ne.s32.totalorder %s22_s9, %s1554_s10  ;;  %p1560_p7 = scmp.lt.s32.totalorder %s1554_s10, %s1554_s10 }
  0x14   :  { %p1561_p8 = por %p1560_p7, %p1559_p6 }
  0x16   :  { %p1562_p9 = pnand %p1561_p8, %p1555_p5 }
  0x18   :  { %1565 = shalt.err (!%p1562_p9)
}
  0x19   :  { %s1638_s11 = smov 128   ;;  %s1639_s12 = smov 8  }
  0x1a   :  { %27 = dma.hbm_to_vmem [thread:$0]  %s2026_s0, 4096, %s22_s9, [#allocation3], %s1638_s11, %s1638_s11, %s1639_s12  }
  0x1b   :  { %s1640_s15 = smov [#allocation7]   ;;  %s1641_s17 = smov [#allocation8]  }
  0x1c   :  { %s47_s16 = sshll.u32 %s1640_s15, 4  ;;  %s61_s1 = sshll.u32 %s1641_s17, 4  ;;  %s48_s16 = int_to_ptr.vmem [resolvable:$true] %s47_s16  ;;  %s62_s1 = int_to_ptr.vmem [resolvable:$true] %s61_s1 }
  0x1d   :  { %s1574_s18 = scalar_lea.vmem %s48_s16, 8192  ;;  %p1579_p11 = scmp.lt.s32.totalorder %s48_s16, %s48_s16 }
  0x1e   :  { %p1575_p10 = scmp.ne.s32.totalorder %s48_s16, %s1574_s18  ;;  %p1580_p12 = scmp.lt.s32.totalorder %s1574_s18, %s1574_s18 }
  0x20   :  { %p1581_p13 = por %p1580_p12, %p1579_p11 }
  0x22   :  { %p1582_p0 = pnand %p1581_p13, %p1575_p10 }
  0x24   :  { %1585 = shalt.err (!%p1582_p0)
}
  0x25   :  { %53 = dma.hbm_to_vmem [thread:$0]  %s2029_s3, 8192, %s48_s16, [#allocation6], %s1635_s27, %s1635_s27, %s1636_s28  }
  0x26   :  { %s1594_s0 = scalar_lea.vmem %s62_s1, 8192  ;;  %p1599_p2 = scmp.lt.s32.totalorder %s62_s1, %s62_s1 }
  0x27   :  { %p1595_p1 = scmp.ne.s32.totalorder %s62_s1, %s1594_s0  ;;  %p1600_p3 = scmp.lt.s32.totalorder %s1594_s0, %s1594_s0 }
  0x29   :  { %p1601_p4 = por %p1600_p3, %p1599_p2 }
  0x2b   :  { %p1602_p5 = pnand %p1601_p4, %p1595_p1 }
  0x2d   :  { %1605 = shalt.err (!%p1602_p5)
}
  0x2e   :  { %67 = dma.hbm_to_vmem [thread:$0]  %s2031_s5, 8192, %s62_s1, [#allocation9], %s1635_s27, %s1635_s27, %s1636_s28  }
  0x2f   :  { %1626 = dma.done.wait [#allocation3], 4096  }
  0x30   :  { %1627 = vsyncadd [#allocation3], 4294963200 }
  0x31   :  { %1628 = dma.done.wait [#allocation6], 12288  }
  0x32   :  { %1629 = vsyncadd [#allocation6], 4294955008 }
  0x33   :  { %1630 = dma.done.wait [#allocation9], 8192  }
  0x34   :  { %1631 = vsyncadd [#allocation9], 4294959104  ;;  %v1642_v0 = vmov 0.0   ;;  %v145_v1 = vld [vmem:[#allocation5 + $0xf8] sm:$0xff]  ;;  %v144_v2 = vld [vmem:[#allocation5 + $0xf0] sm:$0xff] }
  0x35   :  { %222 = vmatprep.mubr.f32.mxu0 %v1642_v0  ;;  %318 = vmatprep.mubr.f32.mxu1 %v1642_v0  ;;  %v143_v3 = vld [vmem:[#allocation5 + $0xe8] sm:$0xff]  ;;  %v142_v4 = vld [vmem:[#allocation5 + $0xe0] sm:$0xff]  ;;  %v141_v5 = vld [vmem:[#allocation5 + $0xd8] sm:$0xff] }
  0x36   :  { %158 = vmatprep.subr.mxu0 %v145_v1  ;;  %1356 = vmatprep.subr.mxu1 %v145_v1  ;;  %v140_v6 = vld [vmem:[#allocation5 + $0xd0] sm:$0xff]  ;;  %v139_v7 = vld [vmem:[#allocation5 + $0xc8] sm:$0xff]  ;;  %v138_v8 = vld [vmem:[#allocation5 + $0xc0] sm:$0xff] }
  0x37   :  { %159 = vmatpush1.msra.mxu0 %v144_v2  ;;  %1372 = vmatpush1.msra.mxu1 %v144_v2  ;;  %v137_v9 = vld [vmem:[#allocation5 + $0xb8] sm:$0xff]  ;;  %v136_v10 = vld [vmem:[#allocation5 + $0xb0] sm:$0xff]  ;;  %v135_v11 = vld [vmem:[#allocation5 + $0xa8] sm:$0xff] }
  0x38   :  { %160 = vmatprep.subr.mxu0 %v143_v3  ;;  %1357 = vmatprep.subr.mxu1 %v143_v3  ;;  %v134_v12 = vld [vmem:[#allocation5 + $0xa0] sm:$0xff]  ;;  %v133_v13 = vld [vmem:[#allocation5 + $0x98] sm:$0xff]  ;;  %v132_v14 = vld [vmem:[#allocation5 + $0x90] sm:$0xff] }
  0x39   :  { %161 = vmatpush1.msra.mxu0 %v142_v4  ;;  %1373 = vmatpush1.msra.mxu1 %v142_v4  ;;  %v131_v15 = vld [vmem:[#allocation5 + $0x88] sm:$0xff]  ;;  %v130_v16 = vld [vmem:[#allocation5 + $0x80] sm:$0xff]  ;;  %v129_v17 = vld [vmem:[#allocation5 + $0x78] sm:$0xff] }
  0x3a   :  { %162 = vmatprep.subr.mxu0 %v141_v5  ;;  %1358 = vmatprep.subr.mxu1 %v141_v5  ;;  %v128_v18 = vld [vmem:[#allocation5 + $0x70] sm:$0xff]  ;;  %v127_v19 = vld [vmem:[#allocation5 + $0x68] sm:$0xff]  ;;  %v126_v20 = vld [vmem:[#allocation5 + $0x60] sm:$0xff] }
  0x3b   :  { %163 = vmatpush1.msra.mxu0 %v140_v6  ;;  %1374 = vmatpush1.msra.mxu1 %v140_v6  ;;  %v125_v21 = vld [vmem:[#allocation5 + $0x58] sm:$0xff]  ;;  %v124_v22 = vld [vmem:[#allocation5 + $0x50] sm:$0xff]  ;;  %v123_v23 = vld [vmem:[#allocation5 + $0x48] sm:$0xff] }
  0x3c   :  { %164 = vmatprep.subr.mxu0 %v139_v7  ;;  %1359 = vmatprep.subr.mxu1 %v139_v7  ;;  %v122_v24 = vld [vmem:[#allocation5 + $0x40] sm:$0xff]  ;;  %v121_v25 = vld [vmem:[#allocation5 + $0x38] sm:$0xff]  ;;  %v120_v26 = vld [vmem:[#allocation5 + $0x30] sm:$0xff] }
  0x3d   :  { %165 = vmatpush1.msra.mxu0 %v138_v8  ;;  %1375 = vmatpush1.msra.mxu1 %v138_v8  ;;  %v119_v27 = vld [vmem:[#allocation5 + $0x28] sm:$0xff]  ;;  %v118_v28 = vld [vmem:[#allocation5 + $0x20] sm:$0xff]  ;;  %v117_v29 = vld [vmem:[#allocation5 + $0x18] sm:$0xff] }
  0x3e   :  { %166 = vmatprep.subr.mxu0 %v137_v9  ;;  %1360 = vmatprep.subr.mxu1 %v137_v9  ;;  %v116_v30 = vld [vmem:[#allocation5 + $0x10] sm:$0xff]  ;;  %v115_v31 = vld [vmem:[#allocation5 + $0x8] sm:$0xff]  ;;  %v114_v32 = vld [vmem:[#allocation5] sm:$0xff] }
  0x3f   :  { %167 = vmatpush1.msra.mxu0 %v136_v10  ;;  %1376 = vmatpush1.msra.mxu1 %v136_v10  ;;  %v82_v33 = vld [vmem:[#allocation2] sm:$0xff]  ;;  %v510_v35 = vld [vmem:[#allocation7 + $0xf8] sm:$0xff]  ;;  %v509_v36 = vld [vmem:[#allocation7 + $0xf0] sm:$0xff] }
  0x40   :  { %168 = vmatprep.subr.mxu0 %v135_v11  ;;  %1361 = vmatprep.subr.mxu1 %v135_v11  ;;  %v98_v34 = vld [vmem:[#allocation2 + $0x80] sm:$0xff]  ;;  %v83_v37 = vld [vmem:[#allocation2 + $0x8] sm:$0xff]  ;;  %v84_v41 = vld [vmem:[#allocation2 + $0x10] sm:$0xff] }
  0x41   :  { %169 = vmatpush1.msra.mxu0 %v134_v12  ;;  %1377 = vmatpush1.msra.mxu1 %v134_v12  ;;  %v99_v38 = vld [vmem:[#allocation2 + $0x88] sm:$0xff]  ;;  %v507_v40 = vld [vmem:[#allocation7 + $0xe0] sm:$0xff]  ;;  %v100_v42 = vld [vmem:[#allocation2 + $0x90] sm:$0xff] }
  0x42   :  { %170 = vmatprep.subr.mxu0 %v133_v13  ;;  %1362 = vmatprep.subr.mxu1 %v133_v13  ;;  %v508_v39 = vld [vmem:[#allocation7 + $0xe8] sm:$0xff]  ;;  %v506_v43 = vld [vmem:[#allocation7 + $0xd8] sm:$0xff]  ;;  %v505_v44 = vld [vmem:[#allocation7 + $0xd0] sm:$0xff] }
  0x43   :  { %171 = vmatpush1.msra.mxu0 %v132_v14  ;;  %1378 = vmatpush1.msra.mxu1 %v132_v14  ;;  %v85_v45 = vld [vmem:[#allocation2 + $0x18] sm:$0xff]  ;;  %v504_v47 = vld [vmem:[#allocation7 + $0xc8] sm:$0xff]  ;;  %v503_v48 = vld [vmem:[#allocation7 + $0xc0] sm:$0xff] }
  0x44   :  { %172 = vmatprep.subr.mxu0 %v131_v15  ;;  %1363 = vmatprep.subr.mxu1 %v131_v15  ;;  %v101_v46 = vld [vmem:[#allocation2 + $0x98] sm:$0xff]  ;;  %v86_v49 = vld [vmem:[#allocation2 + $0x20] sm:$0xff]  ;;  %v501_v52 = vld [vmem:[#allocation7 + $0xb0] sm:$0xff] }
  0x45   :  { %173 = vmatpush1.msra.mxu0 %v130_v16  ;;  %1379 = vmatpush1.msra.mxu1 %v130_v16  ;;  %v102_v50 = vld [vmem:[#allocation2 + $0xa0] sm:$0xff]  ;;  %v502_v51 = vld [vmem:[#allocation7 + $0xb8] sm:$0xff]  ;;  %v87_v53 = vld [vmem:[#allocation2 + $0x28] sm:$0xff] }
  0x46   :  { %174 = vmatprep.subr.mxu0 %v129_v17  ;;  %1364 = vmatprep.subr.mxu1 %v129_v17  ;;  %v103_v54 = vld [vmem:[#allocation2 + $0xa8] sm:$0xff]  ;;  %v499_v56 = vld [vmem:[#allocation7 + $0xa0] sm:$0xff]  ;;  %v88_v57 = vld [vmem:[#allocation2 + $0x30] sm:$0xff] }
  0x47   :  { %175 = vmatpush1.msra.mxu0 %v128_v18  ;;  %1380 = vmatpush1.msra.mxu1 %v128_v18  ;;  %v500_v55 = vld [vmem:[#allocation7 + $0xa8] sm:$0xff]  ;;  %v104_v58 = vld [vmem:[#allocation2 + $0xb0] sm:$0xff]  ;;  %v498_v59 = vld [vmem:[#allocation7 + $0x98] sm:$0xff] }
  0x48   :  { %176 = vmatprep.subr.mxu0 %v127_v19  ;;  %1365 = vmatprep.subr.mxu1 %v127_v19  ;;  %v497_v60 = vld [vmem:[#allocation7 + $0x90] sm:$0xff]  ;;  %v89_v61 = vld [vmem:[#allocation2 + $0x38] sm:$0xff]  ;;  %v496_v63 = vld [vmem:[#allocation7 + $0x88] sm:$0xff] }
  0x49   :  { %177 = vmatpush1.msra.mxu0 %v126_v20  ;;  %1381 = vmatpush1.msra.mxu1 %v126_v20  ;;  %v105_v62 = vld [vmem:[#allocation2 + $0xb8] sm:$0xff]  ;;  %v495_v1 = vld [vmem:[#allocation7 + $0x80] sm:$0xff]  ;;  %v493_v5 = vld [vmem:[#allocation7 + $0x70] sm:$0xff] }
  0x4a   :  { %178 = vmatprep.subr.mxu0 %v125_v21  ;;  %1366 = vmatprep.subr.mxu1 %v125_v21  ;;  %v90_v2 = vld [vmem:[#allocation2 + $0x40] sm:$0xff]  ;;  %v494_v4 = vld [vmem:[#allocation7 + $0x78] sm:$0xff]  ;;  %v91_v6 = vld [vmem:[#allocation2 + $0x48] sm:$0xff] }
  0x4b   :  { %179 = vmatpush1.msra.mxu0 %v124_v22  ;;  %1382 = vmatpush1.msra.mxu1 %v124_v22  ;;  %v106_v3 = vld [vmem:[#allocation2 + $0xc0] sm:$0xff]  ;;  %v107_v7 = vld [vmem:[#allocation2 + $0xc8] sm:$0xff]  ;;  %v92_v10 = vld [vmem:[#allocation2 + $0x50] sm:$0xff] }
  0x4c   :  { %180 = vmatprep.subr.mxu0 %v123_v23  ;;  %1367 = vmatprep.subr.mxu1 %v123_v23  ;;  %v492_v8 = vld [vmem:[#allocation7 + $0x68] sm:$0xff]  ;;  %v491_v9 = vld [vmem:[#allocation7 + $0x60] sm:$0xff]  ;;  %v108_v11 = vld [vmem:[#allocation2 + $0xd0] sm:$0xff] }
  0x4d   :  { %181 = vmatpush1.msra.mxu0 %v122_v24  ;;  %1383 = vmatpush1.msra.mxu1 %v122_v24  ;;  %v490_v12 = vld [vmem:[#allocation7 + $0x58] sm:$0xff]  ;;  %v489_v13 = vld [vmem:[#allocation7 + $0x50] sm:$0xff]  ;;  %v488_v16 = vld [vmem:[#allocation7 + $0x48] sm:$0xff] }
  0x4e   :  { %182 = vmatprep.subr.mxu0 %v121_v25  ;;  %1368 = vmatprep.subr.mxu1 %v121_v25  ;;  %v93_v14 = vld [vmem:[#allocation2 + $0x58] sm:$0xff]  ;;  %v487_v17 = vld [vmem:[#allocation7 + $0x40] sm:$0xff]  ;;  %v485_v21 = vld [vmem:[#allocation7 + $0x30] sm:$0xff] }
  0x4f   :  { %183 = vmatpush1.msra.mxu0 %v120_v26  ;;  %1384 = vmatpush1.msra.mxu1 %v120_v26  ;;  %v109_v15 = vld [vmem:[#allocation2 + $0xd8] sm:$0xff]  ;;  %v94_v18 = vld [vmem:[#allocation2 + $0x60] sm:$0xff]  ;;  %v95_v22 = vld [vmem:[#allocation2 + $0x68] sm:$0xff] }
  0x50   :  { %184 = vmatprep.subr.mxu0 %v119_v27  ;;  %1369 = vmatprep.subr.mxu1 %v119_v27  ;;  %v110_v19 = vld [vmem:[#allocation2 + $0xe0] sm:$0xff]  ;;  %v486_v20 = vld [vmem:[#allocation7 + $0x38] sm:$0xff]  ;;  %v111_v23 = vld [vmem:[#allocation2 + $0xe8] sm:$0xff] }
  0x51   :  { %185 = vmatpush1.msra.mxu0 %v118_v28  ;;  %1385 = vmatpush1.msra.mxu1 %v118_v28  ;;  %v484_v24 = vld [vmem:[#allocation7 + $0x28] sm:$0xff]  ;;  %v483_v25 = vld [vmem:[#allocation7 + $0x20] sm:$0xff]  ;;  %v96_v26 = vld [vmem:[#allocation2 + $0x70] sm:$0xff] }
  0x52   :  { %186 = vmatprep.subr.mxu0 %v117_v29  ;;  %1370 = vmatprep.subr.mxu1 %v117_v29  ;;  %v112_v27 = vld [vmem:[#allocation2 + $0xf0] sm:$0xff]  ;;  %v482_v28 = vld [vmem:[#allocation7 + $0x18] sm:$0xff] }
  0x53   :  { %187 = vmatpush1.msra.mxu0 %v116_v30  ;;  %1386 = vmatpush1.msra.mxu1 %v116_v30  ;;  %v481_v29 = vld [vmem:[#allocation7 + $0x10] sm:$0xff]  ;;  %v97_v30 = vld [vmem:[#allocation2 + $0x78] sm:$0xff] }
  0x54   :  { %188 = vmatprep.subr.mxu0 %v115_v31  ;;  %1371 = vmatprep.subr.mxu1 %v115_v31  ;;  %v113_v31 = vld [vmem:[#allocation2 + $0xf8] sm:$0xff] }
  0x55   :  { %189 = vmatpush1.msra.mxu0 %v114_v32  ;;  %1387 = vmatpush1.msra.mxu1 %v114_v32  ;;  %v480_v32 = vld [vmem:[#allocation7 + $0x8] sm:$0xff] }
  0x56   :  { %223 = vmatmul.mubr.f32.vlgmr.msra.gmra.mxu0 %v82_v33  ;;  %319 = vmatmul.mubr.f32.vlgmr.msra.gmra.mxu1 %v98_v34  ;;  %v479_v33 = vld [vmem:[#allocation7] sm:$0xff]  ;;  %v542_v34 = vld [vmem:[#allocation7 + $0x1f8] sm:$0xff] }
  0x57   :  { %228 = vmatprep.mubr.f32.mxu0 %v1642_v0  ;;  %324 = vmatprep.mubr.f32.mxu1 %v1642_v0 }
  0x58   :  { %555 = vmatprep.subr.mxu1 %v510_v35  ;;  %v541_v35 = vld [vmem:[#allocation7 + $0x1f0] sm:$0xff] }
  0x59   :  { %556 = vmatpush1.msra.mxu1 %v509_v36  ;;  %v540_v36 = vld [vmem:[#allocation7 + $0x1e8] sm:$0xff] }
  0x5a   :  { %229 = vmatmul.mubr.f32.gmra.mxu0 %v83_v37  ;;  %325 = vmatmul.mubr.f32.gmra.mxu1 %v99_v38  ;;  %v539_v37 = vld [vmem:[#allocation7 + $0x1e0] sm:$0xff]  ;;  %v538_v38 = vld [vmem:[#allocation7 + $0x1d8] sm:$0xff] }
  0x5b   :  { %234 = vmatprep.mubr.f32.mxu0 %v1642_v0  ;;  %330 = vmatprep.mubr.f32.mxu1 %v1642_v0 }
  0x5c   :  { %557 = vmatprep.subr.mxu1 %v508_v39  ;;  %v537_v39 = vld [vmem:[#allocation7 + $0x1d0] sm:$0xff] }
  0x5d   :  { %558 = vmatpush1.msra.mxu1 %v507_v40  ;;  %v535_v40 = vld [vmem:[#allocation7 + $0x1c0] sm:$0xff] }
  0x5e   :  { %235 = vmatmul.mubr.f32.gmra.mxu0 %v84_v41  ;;  %331 = vmatmul.mubr.f32.gmra.mxu1 %v100_v42  ;;  %v534_v41 = vld [vmem:[#allocation7 + $0x1b8] sm:$0xff]  ;;  %v533_v42 = vld [vmem:[#allocation7 + $0x1b0] sm:$0xff] }
  0x5f   :  { %240 = vmatprep.mubr.f32.mxu0 %v1642_v0  ;;  %336 = vmatprep.mubr.f32.mxu1 %v1642_v0 }
  0x60   :  { %559 = vmatprep.subr.mxu1 %v506_v43  ;;  %v532_v43 = vld [vmem:[#allocation7 + $0x1a8] sm:$0xff] }
  0x61   :  { %560 = vmatpush1.msra.mxu1 %v505_v44  ;;  %v531_v44 = vld [vmem:[#allocation7 + $0x1a0] sm:$0xff] }
  0x62   :  { %241 = vmatmul.mubr.f32.gmra.mxu0 %v85_v45  ;;  %337 = vmatmul.mubr.f32.gmra.mxu1 %v101_v46  ;;  %v530_v45 = vld [vmem:[#allocation7 + $0x198] sm:$0xff]  ;;  %v529_v46 = vld [vmem:[#allocation7 + $0x190] sm:$0xff] }
  0x63   :  { %246 = vmatprep.mubr.f32.mxu0 %v1642_v0  ;;  %342 = vmatprep.mubr.f32.mxu1 %v1642_v0 }
  0x64   :  { %561 = vmatprep.subr.mxu1 %v504_v47  ;;  %v528_v47 = vld [vmem:[#allocation7 + $0x188] sm:$0xff] }
  0x65   :  { %562 = vmatpush1.msra.mxu1 %v503_v48  ;;  %v527_v48 = vld [vmem:[#allocation7 + $0x180] sm:$0xff] }
  0x66   :  { %247 = vmatmul.mubr.f32.gmra.mxu0 %v86_v49  ;;  %343 = vmatmul.mubr.f32.gmra.mxu1 %v102_v50  ;;  %v526_v49 = vld [vmem:[#allocation7 + $0x178] sm:$0xff]  ;;  %v525_v50 = vld [vmem:[#allocation7 + $0x170] sm:$0xff] }
  0x67   :  { %252 = vmatprep.mubr.f32.mxu0 %v1642_v0  ;;  %348 = vmatprep.mubr.f32.mxu1 %v1642_v0 }
  0x68   :  { %563 = vmatprep.subr.mxu1 %v502_v51  ;;  %v524_v51 = vld [vmem:[#allocation7 + $0x168] sm:$0xff] }
  0x69   :  { %564 = vmatpush1.msra.mxu1 %v501_v52  ;;  %v523_v52 = vld [vmem:[#allocation7 + $0x160] sm:$0xff] }
  0x6a   :  { %253 = vmatmul.mubr.f32.gmra.mxu0 %v87_v53  ;;  %349 = vmatmul.mubr.f32.gmra.mxu1 %v103_v54  ;;  %v522_v53 = vld [vmem:[#allocation7 + $0x158] sm:$0xff]  ;;  %v521_v54 = vld [vmem:[#allocation7 + $0x150] sm:$0xff] }
  0x6b   :  { %258 = vmatprep.mubr.f32.mxu0 %v1642_v0  ;;  %354 = vmatprep.mubr.f32.mxu1 %v1642_v0 }
  0x6c   :  { %565 = vmatprep.subr.mxu1 %v500_v55  ;;  %v520_v55 = vld [vmem:[#allocation7 + $0x148] sm:$0xff] }
  0x6d   :  { %566 = vmatpush1.msra.mxu1 %v499_v56  ;;  %v519_v56 = vld [vmem:[#allocation7 + $0x140] sm:$0xff] }
  0x6e   :  { %259 = vmatmul.mubr.f32.gmra.mxu0 %v88_v57  ;;  %355 = vmatmul.mubr.f32.gmra.mxu1 %v104_v58  ;;  %v518_v57 = vld [vmem:[#allocation7 + $0x138] sm:$0xff]  ;;  %v517_v58 = vld [vmem:[#allocation7 + $0x130] sm:$0xff] }
  0x6f   :  { %264 = vmatprep.mubr.f32.mxu0 %v1642_v0  ;;  %360 = vmatprep.mubr.f32.mxu1 %v1642_v0 }
  0x70   :  { %567 = vmatprep.subr.mxu1 %v498_v59  ;;  %v516_v59 = vld [vmem:[#allocation7 + $0x128] sm:$0xff] }
  0x71   :  { %568 = vmatpush1.msra.mxu1 %v497_v60  ;;  %v515_v60 = vld [vmem:[#allocation7 + $0x120] sm:$0xff] }
  0x72   :  { %265 = vmatmul.mubr.f32.gmra.mxu0 %v89_v61  ;;  %361 = vmatmul.mubr.f32.gmra.mxu1 %v105_v62  ;;  %v514_v61 = vld [vmem:[#allocation7 + $0x118] sm:$0xff]  ;;  %v513_v62 = vld [vmem:[#allocation7 + $0x110] sm:$0xff] }
  0x73   :  { %270 = vmatprep.mubr.f32.mxu0 %v1642_v0  ;;  %366 = vmatprep.mubr.f32.mxu1 %v1642_v0 }
  0x74   :  { %569 = vmatprep.subr.mxu1 %v496_v63  ;;  %v512_v63 = vld [vmem:[#allocation7 + $0x108] sm:$0xff] }
  0x75   :  { %570 = vmatpush1.msra.mxu1 %v495_v1  ;;  %v511_v1 = vld [vmem:[#allocation7 + $0x100] sm:$0xff] }
  0x76   :  { %271 = vmatmul.mubr.f32.gmra.mxu0 %v90_v2  ;;  %367 = vmatmul.mubr.f32.gmra.mxu1 %v106_v3  ;;  %v148_v2 = vlaneseq }
  0x77   :  { %276 = vmatprep.mubr.f32.mxu0 %v1642_v0  ;;  %372 = vmatprep.mubr.f32.mxu1 %v1642_v0 }
  0x78   :  { %571 = vmatprep.subr.mxu1 %v494_v4  ;;  %v149_v3 = vshrl.u32 %v148_v2, 7 }
  0x79   :  { %572 = vmatpush1.msra.mxu1 %v493_v5  ;;  %v146_v5 = vld [vmem:[%s2028_s2] sm:$0x3] }
  0x7a   :  { %277 = vmatmul.mubr.f32.gmra.mxu0 %v91_v6  ;;  %373 = vmatmul.mubr.f32.gmra.mxu1 %v107_v7  ;;  %v1737_v4 = vsub.s32 0, %v149_v3  ;;  %v1742_v6 = vsub.s32 1, %v149_v3 }
  0x7b   :  { %282 = vmatprep.mubr.f32.mxu0 %v1642_v0  ;;  %378 = vmatprep.mubr.f32.mxu1 %v1642_v0 }
  0x7c   :  { %573 = vmatprep.subr.mxu1 %v492_v8  ;;  %v1745_v7 = vrot.slane %v146_v5, %v1737_v4  ;;  %v1748_v8 = vrot.slane %v146_v5, %v1742_v6 }
  0x7d   :  { %574 = vmatpush1.msra.mxu1 %v491_v9 }
  0x7e   :  { %283 = vmatmul.mubr.f32.gmra.mxu0 %v92_v10  ;;  %379 = vmatmul.mubr.f32.gmra.mxu1 %v108_v11 }
  0x7f   :  { %288 = vmatprep.mubr.f32.mxu0 %v1642_v0  ;;  %384 = vmatprep.mubr.f32.mxu1 %v1642_v0 }
  0x80   :  { %575 = vmatprep.subr.mxu1 %v490_v12 }
  0x81   :  { %576 = vmatpush1.msra.mxu1 %v489_v13 }
  0x82   :  { %289 = vmatmul.mubr.f32.gmra.mxu0 %v93_v14  ;;  %385 = vmatmul.mubr.f32.gmra.mxu1 %v109_v15 }
  0x83   :  { %294 = vmatprep.mubr.f32.mxu0 %v1642_v0  ;;  %390 = vmatprep.mubr.f32.mxu1 %v1642_v0 }
  0x84   :  { %577 = vmatprep.subr.mxu1 %v488_v16 }
  0x85   :  { %578 = vmatpush1.msra.mxu1 %v487_v17  ;;  %v907_v17 = vld [vmem:[#allocation8 + $0xf8] sm:$0xff] }
  0x86   :  { %295 = vmatmul.mubr.f32.gmra.mxu0 %v94_v18  ;;  %391 = vmatmul.mubr.f32.gmra.mxu1 %v110_v19  ;;  %v906_v18 = vld [vmem:[#allocation8 + $0xf0] sm:$0xff]  ;;  %v905_v19 = vld [vmem:[#allocation8 + $0xe8] sm:$0xff] }
  0x87   :  { %300 = vmatprep.mubr.f32.mxu0 %v1642_v0  ;;  %396 = vmatprep.mubr.f32.mxu1 %v1642_v0 }
  0x88   :  { %579 = vmatprep.subr.mxu1 %v486_v20  ;;  %952 = vmatprep.subr.mxu0 %v907_v17  ;;  %v885_v17 = vld [vmem:[#allocation8 + $0x48] sm:$0xff] }
  0x89   :  { %580 = vmatpush1.msra.mxu1 %v485_v21  ;;  %v904_v21 = vld [vmem:[#allocation8 + $0xe0] sm:$0xff]  ;;  %953 = vmatpush1.msra.mxu0 %v906_v18 }
  0x8a   :  { %301 = vmatmul.mubr.f32.gmra.mxu0 %v95_v22  ;;  %397 = vmatmul.mubr.f32.gmra.mxu1 %v111_v23 }
  0x8b   :  { %306 = vmatprep.mubr.f32.mxu0 %v1642_v0  ;;  %402 = vmatprep.mubr.f32.mxu1 %v1642_v0 }
  0x8c   :  { %581 = vmatprep.subr.mxu1 %v484_v24  ;;  %954 = vmatprep.subr.mxu0 %v905_v19  ;;  %v884_v19 = vld [vmem:[#allocation8 + $0x40] sm:$0xff] }
  0x8d   :  { %582 = vmatpush1.msra.mxu1 %v483_v25  ;;  %955 = vmatpush1.msra.mxu0 %v904_v21 }
  0x8e   :  { %307 = vmatmul.mubr.f32.gmra.mxu0 %v96_v26  ;;  %403 = vmatmul.mubr.f32.gmra.mxu1 %v112_v27  ;;  %v903_v26 = vld [vmem:[#allocation8 + $0xd8] sm:$0xff] }
  0x8f   :  { %312 = vmatprep.mubr.f32.mxu0 %v1642_v0  ;;  %408 = vmatprep.mubr.f32.mxu1 %v1642_v0  ;;  %v536_v0 = vld [vmem:[#allocation7 + $0x1c8] sm:$0xff] }
  0x90   :  { %583 = vmatprep.subr.mxu1 %v482_v28  ;;  %v902_v28 = vld [vmem:[#allocation8 + $0xd0] sm:$0xff]  ;;  %956 = vmatprep.subr.mxu0 %v903_v26 }
  0x91   :  { %584 = vmatpush1.msra.mxu1 %v481_v29  ;;  %957 = vmatpush1.msra.mxu0 %v902_v28 }
  0x92   :  { %313 = vmatmul.mubr.f32.gmra.mxu0 %v97_v30  ;;  %409 = vmatmul.mubr.f32.gmra.mxu1 %v113_v31  ;;  %v901_v30 = vld [vmem:[#allocation8 + $0xc8] sm:$0xff] }
  0x93   :  { %585 = vmatprep.subr.mxu1 %v480_v32  ;;  %v900_v32 = vld [vmem:[#allocation8 + $0xc0] sm:$0xff]  ;;  %958 = vmatprep.subr.mxu0 %v901_v30 }
  0x94   :  { %586 = vmatpush1.msra.mxu1 %v479_v33  ;;  %959 = vmatpush1.msra.mxu0 %v900_v32 }
  0x95   :  { %587 = vmatprep.subr.mxu1 %v542_v34 }
  0x96   :  { %588 = vmatpush2.msra.mxu1 %v541_v35 }
  0x97   :  { %589 = vmatprep.subr.mxu1 %v540_v36 }
  0x98   :  { %590 = vmatpush2.msra.mxu1 %v539_v37  ;;  %v899_v37 = vld [vmem:[#allocation8 + $0xb8] sm:$0xff] }
  0x99   :  { %591 = vmatprep.subr.mxu1 %v538_v38  ;;  %960 = vmatprep.subr.mxu0 %v899_v37  ;;  %v879_v37 = vld [vmem:[#allocation8 + $0x18] sm:$0xff] }
  0x9a   :  { %592 = vmatpush2.msra.mxu1 %v537_v39  ;;  %v898_v39 = vld [vmem:[#allocation8 + $0xb0] sm:$0xff] }
  0x9b   :  { %593 = vmatprep.subr.mxu1 %v536_v0  ;;  %961 = vmatpush1.msra.mxu0 %v898_v39  ;;  %v878_v39 = vld [vmem:[#allocation8 + $0x10] sm:$0xff] }
  0x9c   :  { %594 = vmatpush2.msra.mxu1 %v535_v40  ;;  %v897_v40 = vld [vmem:[#allocation8 + $0xa8] sm:$0xff] }
  0x9d   :  { %595 = vmatprep.subr.mxu1 %v534_v41  ;;  %962 = vmatprep.subr.mxu0 %v897_v40  ;;  %v877_v40 = vld [vmem:[#allocation8 + $0x8] sm:$0xff] }
  0x9e   :  { %596 = vmatpush2.msra.mxu1 %v533_v42  ;;  %v896_v42 = vld [vmem:[#allocation8 + $0xa0] sm:$0xff] }
  0x9f   :  { %597 = vmatprep.subr.mxu1 %v532_v43  ;;  %963 = vmatpush1.msra.mxu0 %v896_v42  ;;  %v876_v42 = vld [vmem:[#allocation8] sm:$0xff] }
  0xa0   :  { %598 = vmatpush2.msra.mxu1 %v531_v44 }
  0xa1   :  { %599 = vmatprep.subr.mxu1 %v530_v45 }
  0xa2   :  { %600 = vmatpush2.msra.mxu1 %v529_v46 }
  0xa3   :  { %601 = vmatprep.subr.mxu1 %v528_v47  ;;  %v895_v47 = vld [vmem:[#allocation8 + $0x98] sm:$0xff] }
  0xa4   :  { %602 = vmatpush2.msra.mxu1 %v527_v48  ;;  %964 = vmatprep.subr.mxu0 %v895_v47 }
  0xa5   :  { %603 = vmatprep.subr.mxu1 %v526_v49  ;;  %v894_v49 = vld [vmem:[#allocation8 + $0x90] sm:$0xff] }
  0xa6   :  { %604 = vmatpush2.msra.mxu1 %v525_v50  ;;  %965 = vmatpush1.msra.mxu0 %v894_v49 }
  0xa7   :  { %605 = vmatprep.subr.mxu1 %v524_v51  ;;  %v893_v51 = vld [vmem:[#allocation8 + $0x88] sm:$0xff] }
  0xa8   :  { %606 = vmatpush2.msra.mxu1 %v523_v52  ;;  %966 = vmatprep.subr.mxu0 %v893_v51 }
  0xa9   :  { %607 = vmatprep.subr.mxu1 %v522_v53  ;;  %v892_v53 = vld [vmem:[#allocation8 + $0x80] sm:$0xff] }
  0xaa   :  { %608 = vmatpush2.msra.mxu1 %v521_v54  ;;  %967 = vmatpush1.msra.mxu0 %v892_v53 }
  0xab   :  { %609 = vmatprep.subr.mxu1 %v520_v55 }
  0xac   :  { %610 = vmatpush2.msra.mxu1 %v519_v56 }
  0xad   :  { %611 = vmatprep.subr.mxu1 %v518_v57 }
  0xae   :  { %612 = vmatpush2.msra.mxu1 %v517_v58  ;;  %v891_v58 = vld [vmem:[#allocation8 + $0x78] sm:$0xff] }
  0xaf   :  { %613 = vmatprep.subr.mxu1 %v516_v59  ;;  %968 = vmatprep.subr.mxu0 %v891_v58 }
  0xb0   :  { %614 = vmatpush2.msra.mxu1 %v515_v60  ;;  %v890_v60 = vld [vmem:[#allocation8 + $0x70] sm:$0xff] }
  0xb1   :  { %615 = vmatprep.subr.mxu1 %v514_v61  ;;  %969 = vmatpush1.msra.mxu0 %v890_v60  ;;  %v935_v60 = vld [vmem:[#allocation8 + $0x1d8] sm:$0xff] }
  0xb2   :  { %616 = vmatpush2.msra.mxu1 %v513_v62  ;;  %v889_v62 = vld [vmem:[#allocation8 + $0x68] sm:$0xff] }
  0xb3   :  { %617 = vmatprep.subr.mxu1 %v512_v63  ;;  %970 = vmatprep.subr.mxu0 %v889_v62  ;;  %v934_v62 = vld [vmem:[#allocation8 + $0x1d0] sm:$0xff] }
  0xb4   :  { %618 = vmatpush2.msra.mxu1 %v511_v1  ;;  %v888_v1 = vld [vmem:[#allocation8 + $0x60] sm:$0xff] }
  0xb5   :  { %971 = vmatpush1.msra.mxu0 %v888_v1  ;;  %v933_v1 = vld [vmem:[#allocation8 + $0x1c8] sm:$0xff] }
 0x116   :  { %v224_v9 = vpop.f32.mrf.mxu0  ;;  %v1750_v10 = vpop.f32.mrf.mxu1 }
 0x117   :  { %v225_v11 = vadd.f32 %v224_v9, %v1745_v7 }
 0x118   :  { %v226_v12 = vpop.f32.mrf.mxu0  ;;  %v1753_v13 = vpop.f32.mrf.mxu1 }
 0x119   :  { %v227_v14 = vadd.f32 %v226_v12, %v1748_v8  ;;  %v415_v22 = vmax.f32 %v225_v11, 0.0  ;;  %v887_v11 = vld [vmem:[#allocation8 + $0x58] sm:$0xff] }
 0x11a   :  { %v230_v15 = vpop.f32.mrf.mxu0  ;;  %v1756_v16 = vpop.f32.mrf.mxu1  ;;  %972 = vmatprep.subr.mxu0 %v887_v11 }
 0x11b   :  { %v416_v20 = vmax.f32 %v227_v14, 0.0  ;;  %v231_v23 = vadd.f32 %v230_v15, %v1745_v7  ;;  %v886_v14 = vld [vmem:[#allocation8 + $0x50] sm:$0xff] }
 0x11c   :  { %v232_v24 = vpop.f32.mrf.mxu0  ;;  %v1759_v25 = vpop.f32.mrf.mxu1  ;;  %973 = vmatpush1.msra.mxu0 %v886_v14 }
 0x11d   :  { %v233_v27 = vadd.f32 %v232_v24, %v1748_v8  ;;  %619 = vmatprep.mubr.f32.mxu1 %v416_v20  ;;  %v417_v33 = vmax.f32 %v231_v23, 0.0  ;;  %v883_v24 = vld [vmem:[#allocation8 + $0x38] sm:$0xff]  ;;  %974 = vmatprep.subr.mxu0 %v885_v17 }
 0x11e   :  { %v236_v29 = vpop.f32.mrf.mxu0  ;;  %620 = vmatmul.mubr.f32.vlgmr.msra.gmra.mxu1 %v415_v22  ;;  %v1763_v36 = vpop.f32.mrf.mxu1  ;;  %975 = vmatpush1.msra.mxu0 %v884_v19 }
 0x11f   :  { %v418_v31 = vmax.f32 %v233_v27, 0.0  ;;  %v237_v34 = vadd.f32 %v236_v29, %v1745_v7  ;;  %v882_v27 = vld [vmem:[#allocation8 + $0x30] sm:$0xff]  ;;  %v881_v29 = vld [vmem:[#allocation8 + $0x28] sm:$0xff]  ;;  %976 = vmatprep.subr.mxu0 %v883_v24 }
 0x120   :  { %v238_v35 = vpop.f32.mrf.mxu0  ;;  %v1767_v46 = vpop.f32.mrf.mxu1  ;;  %977 = vmatpush1.msra.mxu0 %v882_v27 }
 0x121   :  { %v239_v38 = vadd.f32 %v238_v35, %v1748_v8  ;;  %625 = vmatprep.mubr.f32.mxu1 %v418_v31  ;;  %v419_v43 = vmax.f32 %v237_v34, 0.0  ;;  %v880_v31 = vld [vmem:[#allocation8 + $0x20] sm:$0xff]  ;;  %978 = vmatprep.subr.mxu0 %v881_v29  ;;  %v927_v29 = vld [vmem:[#allocation8 + $0x198] sm:$0xff] }
 0x122   :  { %v242_v0 = vpop.f32.mrf.mxu0  ;;  %626 = vmatmul.mubr.f32.gmra.mxu1 %v417_v33  ;;  %v1771_v57 = vpop.f32.mrf.mxu1  ;;  %979 = vmatpush1.msra.mxu0 %v880_v31  ;;  %v926_v31 = vld [vmem:[#allocation8 + $0x190] sm:$0xff] }
 0x123   :  { %v420_v41 = vmax.f32 %v239_v38, 0.0  ;;  %v243_v44 = vadd.f32 %v242_v0, %v1745_v7  ;;  %980 = vmatprep.subr.mxu0 %v879_v37  ;;  %v924_v37 = vld [vmem:[#allocation8 + $0x180] sm:$0xff] }
 0x124   :  { %v244_v45 = vpop.f32.mrf.mxu0  ;;  %v1775_v9 = vpop.f32.mrf.mxu1  ;;  %981 = vmatpush1.msra.mxu0 %v878_v39 }
 0x125   :  { %v245_v48 = vadd.f32 %v244_v45, %v1748_v8  ;;  %631 = vmatprep.mubr.f32.mxu1 %v420_v41  ;;  %v421_v54 = vmax.f32 %v243_v44, 0.0  ;;  %982 = vmatprep.subr.mxu0 %v877_v40 }
 0x126   :  { %v248_v50 = vpop.f32.mrf.mxu0  ;;  %632 = vmatmul.mubr.f32.gmra.mxu1 %v419_v43  ;;  %v1779_v23 = vpop.f32.mrf.mxu1  ;;  %983 = vmatpush1.msra.mxu0 %v876_v42 }
 0x127   :  { %v422_v52 = vmax.f32 %v245_v48, 0.0  ;;  %v249_v55 = vadd.f32 %v248_v50, %v1745_v7  ;;  %v939_v48 = vld [vmem:[#allocation8 + $0x1f8] sm:$0xff]  ;;  %v938_v50 = vld [vmem:[#allocation8 + $0x1f0] sm:$0xff] }
 0x128   :  { %v250_v56 = vpop.f32.mrf.mxu0  ;;  %v1783_v35 = vpop.f32.mrf.mxu1  ;;  %984 = vmatprep.subr.mxu0 %v939_v48 }
 0x129   :  { %v251_v59 = vadd.f32 %v250_v56, %v1748_v8  ;;  %637 = vmatprep.mubr.f32.mxu1 %v422_v52  ;;  %v423_v2 = vmax.f32 %v249_v55, 0.0  ;;  %v937_v52 = vld [vmem:[#allocation8 + $0x1e8] sm:$0xff]  ;;  %985 = vmatpush2.msra.mxu0 %v938_v50 }
 0x12a   :  { %v254_v61 = vpop.f32.mrf.mxu0  ;;  %638 = vmatmul.mubr.f32.gmra.mxu1 %v421_v54  ;;  %v1787_v47 = vpop.f32.mrf.mxu1  ;;  %v936_v54 = vld [vmem:[#allocation8 + $0x1e0] sm:$0xff]  ;;  %986 = vmatprep.subr.mxu0 %v937_v52 }
 0x12b   :  { %v424_v63 = vmax.f32 %v251_v59, 0.0  ;;  %v255_v3 = vadd.f32 %v254_v61, %v1745_v7  ;;  %987 = vmatpush2.msra.mxu0 %v936_v54  ;;  %v919_v54 = vld [vmem:[#allocation8 + $0x158] sm:$0xff] }
 0x12c   :  { %v256_v5 = vpop.f32.mrf.mxu0  ;;  %v1791_v59 = vpop.f32.mrf.mxu1  ;;  %988 = vmatprep.subr.mxu0 %v935_v60  ;;  %v917_v60 = vld [vmem:[#allocation8 + $0x148] sm:$0xff] }
 0x12d   :  { %v257_v12 = vadd.f32 %v256_v5, %v1748_v8  ;;  %643 = vmatprep.mubr.f32.mxu1 %v424_v63  ;;  %v425_v20 = vmax.f32 %v255_v3, 0.0  ;;  %v932_v3 = vld [vmem:[#allocation8 + $0x1c0] sm:$0xff]  ;;  %989 = vmatpush2.msra.mxu0 %v934_v62 }
 0x12e   :  { %v260_v15 = vpop.f32.mrf.mxu0  ;;  %644 = vmatmul.mubr.f32.gmra.mxu1 %v423_v2  ;;  %v1795_v14 = vpop.f32.mrf.mxu1  ;;  %990 = vmatprep.subr.mxu0 %v933_v1  ;;  %v916_v62 = vld [vmem:[#allocation8 + $0x140] sm:$0xff] }
 0x12f   :  { %v426_v18 = vmax.f32 %v257_v12, 0.0  ;;  %v261_v21 = vadd.f32 %v260_v15, %v1745_v7  ;;  %v931_v15 = vld [vmem:[#allocation8 + $0x1b8] sm:$0xff]  ;;  %991 = vmatpush2.msra.mxu0 %v932_v3 }
 0x130   :  { %v262_v22 = vpop.f32.mrf.mxu0  ;;  %992 = vmatprep.subr.mxu0 %v931_v15 }
 0x131   :  { %v263_v26 = vadd.f32 %v262_v22, %v1748_v8  ;;  %649 = vmatprep.mubr.f32.mxu1 %v426_v18  ;;  %v427_v32 = vmax.f32 %v261_v21, 0.0  ;;  %v930_v18 = vld [vmem:[#allocation8 + $0x1b0] sm:$0xff]  ;;  %v928_v22 = vld [vmem:[#allocation8 + $0x1a0] sm:$0xff] }
 0x132   :  { %v266_v28 = vpop.f32.mrf.mxu0  ;;  %650 = vmatmul.mubr.f32.gmra.mxu1 %v425_v20  ;;  %v929_v20 = vld [vmem:[#allocation8 + $0x1a8] sm:$0xff]  ;;  %993 = vmatpush2.msra.mxu0 %v930_v18 }
 0x133   :  { %v428_v30 = vmax.f32 %v263_v26, 0.0  ;;  %v267_v33 = vadd.f32 %v266_v28, %v1745_v7  ;;  %v1799_v28 = vpop.f32.mrf.mxu1  ;;  %994 = vmatprep.subr.mxu0 %v929_v20 }
 0x134   :  { %v268_v34 = vpop.f32.mrf.mxu0  ;;  %995 = vmatpush2.msra.mxu0 %v928_v22 }
 0x135   :  { %v269_v38 = vadd.f32 %v268_v34, %v1748_v8  ;;  %655 = vmatprep.mubr.f32.mxu1 %v428_v30  ;;  %v429_v43 = vmax.f32 %v267_v33, 0.0  ;;  %v925_v33 = vld [vmem:[#allocation8 + $0x188] sm:$0xff]  ;;  %996 = vmatprep.subr.mxu0 %v927_v29  ;;  %v1803_v40 = vpop.f32.mrf.mxu1 }
 0x136   :  { %v272_v0 = vpop.f32.mrf.mxu0  ;;  %656 = vmatmul.mubr.f32.gmra.mxu1 %v427_v32  ;;  %997 = vmatpush2.msra.mxu0 %v926_v31 }
 0x137   :  { %v430_v41 = vmax.f32 %v269_v38, 0.0  ;;  %v273_v44 = vadd.f32 %v272_v0, %v1745_v7  ;;  %998 = vmatprep.subr.mxu0 %v925_v33 }
 0x138   :  { %v274_v45 = vpop.f32.mrf.mxu0  ;;  %999 = vmatpush2.msra.mxu0 %v924_v37 }
 0x139   :  { %v275_v49 = vadd.f32 %v274_v45, %v1748_v8  ;;  %661 = vmatprep.mubr.f32.mxu1 %v430_v41  ;;  %v431_v55 = vmax.f32 %v273_v44, 0.0  ;;  %v923_v41 = vld [vmem:[#allocation8 + $0x178] sm:$0xff]  ;;  %v921_v45 = vld [vmem:[#allocation8 + $0x168] sm:$0xff] }
 0x13a   :  { %v278_v51 = vpop.f32.mrf.mxu0  ;;  %662 = vmatmul.mubr.f32.gmra.mxu1 %v429_v43  ;;  %v922_v43 = vld [vmem:[#allocation8 + $0x170] sm:$0xff]  ;;  %1000 = vmatprep.subr.mxu0 %v923_v41  ;;  %v333_v41 = vadd.f32 %v1763_v36, %v1745_v7  ;;  %v339_v36 = vadd.f32 %v1771_v57, %v1745_v7  ;;  %v359_v57 = vadd.f32 %v1799_v28, %v1748_v8 }
 0x13b   :  { %v432_v53 = vmax.f32 %v275_v49, 0.0  ;;  %v279_v56 = vadd.f32 %v278_v51, %v1745_v7  ;;  %v920_v49 = vld [vmem:[#allocation8 + $0x160] sm:$0xff]  ;;  %1001 = vmatpush2.msra.mxu0 %v922_v43  ;;  %v910_v43 = vld [vmem:[#allocation8 + $0x110] sm:$0xff] }
 0x13c   :  { %v280_v58 = vpop.f32.mrf.mxu0  ;;  %1002 = vmatprep.subr.mxu0 %v921_v45  ;;  %v909_v45 = vld [vmem:[#allocation8 + $0x108] sm:$0xff] }
 0x13d   :  { %v281_v61 = vadd.f32 %v280_v58, %v1748_v8  ;;  %667 = vmatprep.mubr.f32.mxu1 %v432_v53  ;;  %v433_v5 = vmax.f32 %v279_v56, 0.0  ;;  %v1807_v53 = vpop.f32.mrf.mxu1  ;;  %v918_v56 = vld [vmem:[#allocation8 + $0x150] sm:$0xff]  ;;  %1003 = vmatpush2.msra.mxu0 %v920_v49 }
 0x13e   :  { %v284_v63 = vpop.f32.mrf.mxu0  ;;  %668 = vmatmul.mubr.f32.gmra.mxu1 %v431_v55  ;;  %1004 = vmatprep.subr.mxu0 %v919_v54  ;;  %v453_v54 = vmax.f32 %v339_v36, 0.0 }
 0x13f   :  { %v434_v2 = vmax.f32 %v281_v61, 0.0  ;;  %v285_v11 = vadd.f32 %v284_v63, %v1745_v7  ;;  %v1811_v3 = vpop.f32.mrf.mxu1  ;;  %1005 = vmatpush2.msra.mxu0 %v918_v56 }
 0x140   :  { %v286_v12 = vpop.f32.mrf.mxu0  ;;  %1006 = vmatprep.subr.mxu0 %v917_v60  ;;  %v351_v60 = vadd.f32 %v1787_v47, %v1745_v7  ;;  %v363_v47 = vadd.f32 %v1803_v40, %v1745_v7 }
 0x141   :  { %v287_v17 = vadd.f32 %v286_v12, %v1748_v8  ;;  %673 = vmatprep.mubr.f32.mxu1 %v434_v2  ;;  %v435_v24 = vmax.f32 %v285_v11, 0.0  ;;  %1007 = vmatpush2.msra.mxu0 %v916_v62  ;;  %v460_v62 = vmax.f32 %v359_v57, 0.0 }
 0x142   :  { %v290_v19 = vpop.f32.mrf.mxu0  ;;  %674 = vmatmul.mubr.f32.gmra.mxu1 %v433_v5  ;;  %v915_v5 = vld [vmem:[#allocation8 + $0x138] sm:$0xff] }
 0x143   :  { %v436_v21 = vmax.f32 %v287_v17, 0.0  ;;  %v291_v26 = vadd.f32 %v290_v19, %v1745_v7  ;;  %v323_v17 = vadd.f32 %v1753_v13, %v1748_v8  ;;  %1008 = vmatprep.subr.mxu0 %v915_v5  ;;  %v321_v13 = vadd.f32 %v1750_v10, %v1745_v7 }
 0x144   :  { %v292_v27 = vpop.f32.mrf.mxu0  ;;  %v341_v10 = vadd.f32 %v1775_v9, %v1748_v8  ;;  %v347_v9 = vadd.f32 %v1783_v35, %v1748_v8  ;;  %v345_v35 = vadd.f32 %v1779_v23, %v1745_v7  ;;  %v357_v23 = vadd.f32 %v1795_v14, %v1745_v7 }
 0x145   :  { %v293_v30 = vadd.f32 %v292_v27, %v1748_v8  ;;  %679 = vmatprep.mubr.f32.mxu1 %v436_v21  ;;  %v437_v38 = vmax.f32 %v291_v26, 0.0  ;;  %v1817_v21 = vpop.f32.mrf.mxu1  ;;  %v448_v26 = vmax.f32 %v323_v17, 0.0  ;;  %v329_v27 = vadd.f32 %v1759_v25, %v1748_v8  ;;  %v914_v25 = vld [vmem:[#allocation8 + $0x130] sm:$0xff] }
 0x146   :  { %v296_v32 = vpop.f32.mrf.mxu0  ;;  %680 = vmatmul.mubr.f32.gmra.mxu1 %v435_v24  ;;  %v447_v33 = vmax.f32 %v321_v13, 0.0  ;;  %1009 = vmatpush2.msra.mxu0 %v914_v25  ;;  %v371_v28 = vadd.f32 %v1817_v21, %v1748_v8  ;;  %v459_v5 = vmax.f32 %v357_v23, 0.0  ;;  %v369_v14 = vadd.f32 %v1811_v3, %v1745_v7 }
 0x147   :  { %v438_v34 = vmax.f32 %v293_v30, 0.0  ;;  %v297_v39 = vadd.f32 %v296_v32, %v1745_v7  ;;  %v1824_v30 = vpop.f32.mrf.mxu1  ;;  %v450_v31 = vmax.f32 %v329_v27, 0.0  ;;  %v335_v32 = vadd.f32 %v1767_v46, %v1748_v8  ;;  %v912_v46 = vld [vmem:[#allocation8 + $0x120] sm:$0xff] }
 0x148   :  { %v298_v0 = vpop.f32.mrf.mxu0  ;;  %v375_v40 = vadd.f32 %v1824_v30, %v1745_v7 }
 0x149   :  { %v299_v42 = vadd.f32 %v298_v0, %v1748_v8  ;;  %685 = vmatprep.mubr.f32.mxu1 %v438_v34  ;;  %v439_v50 = vmax.f32 %v297_v39, 0.0  ;;  %v327_v34 = vadd.f32 %v1756_v16, %v1745_v7  ;;  %v376_v37 = vpop.f32.mrf.mxu1  ;;  %v913_v39 = vld [vmem:[#allocation8 + $0x128] sm:$0xff]  ;;  %v911_v16 = vld [vmem:[#allocation8 + $0x118] sm:$0xff] }
 0x14a   :  { %v302_v44 = vpop.f32.mrf.mxu0  ;;  %686 = vmatmul.mubr.f32.gmra.mxu1 %v437_v38  ;;  %v452_v38 = vmax.f32 %v335_v32, 0.0  ;;  %1010 = vmatprep.subr.mxu0 %v913_v39 }
 0x14b   :  { %v440_v48 = vmax.f32 %v299_v42, 0.0  ;;  %v303_v51 = vadd.f32 %v302_v44, %v1745_v7  ;;  %v449_v0 = vmax.f32 %v327_v34, 0.0  ;;  %v1834_v42 = vpop.f32.mrf.mxu1  ;;  %1011 = vmatpush2.msra.mxu0 %v912_v46  ;;  %v454_v44 = vmax.f32 %v341_v10, 0.0 }
 0x14c   :  { %v304_v52 = vpop.f32.mrf.mxu0  ;;  %1012 = vmatprep.subr.mxu0 %v911_v16  ;;  %v381_v3 = vadd.f32 %v1834_v42, %v1745_v7 }
 0x14d   :  { %v305_v55 = vadd.f32 %v304_v52, %v1748_v8  ;;  %691 = vmatprep.mubr.f32.mxu1 %v440_v48  ;;  %v441_v63 = vmax.f32 %v303_v51, 0.0  ;;  %1013 = vmatpush2.msra.mxu0 %v910_v43  ;;  %v451_v48 = vmax.f32 %v333_v41, 0.0  ;;  %v382_v49 = vpop.f32.mrf.mxu1  ;;  %v456_v51 = vmax.f32 %v347_v9, 0.0 }
 0x14e   :  { %v308_v58 = vpop.f32.mrf.mxu0  ;;  %692 = vmatmul.mubr.f32.gmra.mxu1 %v439_v50  ;;  %1014 = vmatprep.subr.mxu0 %v909_v45  ;;  %v908_v50 = vld [vmem:[#allocation8 + $0x100] sm:$0xff]  ;;  %v353_v52 = vadd.f32 %v1791_v59, %v1748_v8  ;;  %v365_v59 = vadd.f32 %v1807_v53, %v1748_v8  ;;  %v377_v53 = vadd.f32 %v376_v37, %v1748_v8 }
 0x14f   :  { %v442_v61 = vmax.f32 %v305_v55, 0.0  ;;  %v309_v1 = vadd.f32 %v308_v58, %v1745_v7  ;;  %1015 = vmatpush2.msra.mxu0 %v908_v50  ;;  %v386_v55 = vpop.f32.mrf.mxu1  ;;  %v455_v58 = vmax.f32 %v345_v35, 0.0 }
 0x150   :  { %v310_v2 = vpop.f32.mrf.mxu0  ;;  %v458_v56 = vmax.f32 %v353_v52, 0.0  ;;  %v387_v32 = vadd.f32 %v386_v55, %v1745_v7 }
 0x151   :  { %v311_v11 = vadd.f32 %v310_v2, %v1748_v8  ;;  %697 = vmatprep.mubr.f32.mxu1 %v442_v61  ;;  %v443_v18 = vmax.f32 %v309_v1, 0.0  ;;  %v388_v61 = vpop.f32.mrf.mxu1  ;;  %v462_v2 = vmax.f32 %v365_v59, 0.0 }
 0x152   :  { %v314_v12 = vpop.f32.mrf.mxu0  ;;  %698 = vmatmul.mubr.f32.gmra.mxu1 %v441_v63  ;;  %v457_v63 = vmax.f32 %v351_v60, 0.0  ;;  %v469_v37 = vmax.f32 %v387_v32, 0.0 }
 0x153   :  { %v444_v15 = vmax.f32 %v311_v11, 0.0  ;;  %v315_v19 = vadd.f32 %v314_v12, %v1745_v7  ;;  %v392_v1 = vpop.f32.mrf.mxu1  ;;  %v464_v12 = vmax.f32 %v371_v28, 0.0 }
 0x154   :  { %v316_v20 = vpop.f32.mrf.mxu0  ;;  %v393_v25 = vadd.f32 %v392_v1, %v1745_v7 }
 0x155   :  { %v317_v22 = vadd.f32 %v316_v20, %v1748_v8  ;;  %703 = vmatprep.mubr.f32.mxu1 %v444_v15  ;;  %v445_v29 = vmax.f32 %v315_v19, 0.0  ;;  %v394_v11 = vpop.f32.mrf.mxu1  ;;  %v461_v15 = vmax.f32 %v363_v47, 0.0  ;;  %v383_v19 = vadd.f32 %v382_v49, %v1748_v8  ;;  %v543_v49 = vld [vmem:[%s2030_s4] sm:$0x3] }
 0x156   :  { %704 = vmatmul.mubr.f32.gmra.mxu1 %v443_v18  ;;  %v466_v18 = vmax.f32 %v377_v53, 0.0  ;;  %v463_v20 = vmax.f32 %v369_v14, 0.0  ;;  %v395_v13 = vadd.f32 %v394_v11, %v1748_v8  ;;  %v1878_v50 = vrot.slane %v543_v49, %v1737_v4 }
 0x157   :  { %v446_v24 = vmax.f32 %v317_v22, 0.0  ;;  %v398_v17 = vpop.f32.mrf.mxu1  ;;  %v468_v22 = vmax.f32 %v383_v19, 0.0 }
 0x158   :  { %v399_v41 = vadd.f32 %v398_v17, %v1745_v7 }
 0x159   :  { %709 = vmatprep.mubr.f32.mxu1 %v446_v24  ;;  %v400_v21 = vpop.f32.mrf.mxu1  ;;  %v389_v24 = vadd.f32 %v388_v61, %v1748_v8 }
 0x15a   :  { %710 = vmatmul.mubr.f32.gmra.mxu1 %v445_v29  ;;  %v401_v34 = vadd.f32 %v400_v21, %v1748_v8  ;;  %v473_v43 = vmax.f32 %v399_v41, 0.0 }
 0x15b   :  { %715 = vmatprep.mubr.f32.mxu1 %v448_v26  ;;  %v465_v26 = vmax.f32 %v375_v40, 0.0  ;;  %v404_v27 = vpop.f32.mrf.mxu1  ;;  %v470_v29 = vmax.f32 %v389_v24, 0.0 }
 0x15c   :  { %v474_v10 = vmax.f32 %v401_v34, 0.0 }
 0x15d   :  { %v406_v30 = vpop.f32.mrf.mxu1 }
 0x15e   :  { %716 = vmatmul.mubr.f32.gmra.mxu1 %v447_v33  ;;  %v472_v33 = vmax.f32 %v395_v13, 0.0  ;;  %v407_v39 = vadd.f32 %v406_v30, %v1748_v8 }
 0x15f   :  { %721 = vmatprep.mubr.f32.mxu1 %v450_v31  ;;  %v467_v31 = vmax.f32 %v381_v3, 0.0 }
 0x160   :  { %v476_v46 = vmax.f32 %v407_v39, 0.0 }
 0x162   :  { %722 = vmatmul.mubr.f32.gmra.mxu1 %v449_v0  ;;  %v471_v0 = vmax.f32 %v393_v25, 0.0 }
 0x163   :  { %727 = vmatprep.mubr.f32.mxu1 %v452_v38  ;;  %v410_v38 = vpop.f32.mrf.mxu1 }
 0x165   :  { %v412_v42 = vpop.f32.mrf.mxu1 }
 0x166   :  { %728 = vmatmul.mubr.f32.gmra.mxu1 %v451_v48  ;;  %v413_v16 = vadd.f32 %v412_v42, %v1748_v8  ;;  %v411_v48 = vadd.f32 %v410_v38, %v1745_v7  ;;  %v1881_v8 = vrot.slane %v543_v49, %v1742_v6 }
 0x167   :  { %733 = vmatprep.mubr.f32.mxu1 %v454_v44  ;;  %v405_v44 = vadd.f32 %v404_v27, %v1745_v7 }
 0x168   :  { %v478_v9 = vmax.f32 %v413_v16, 0.0  ;;  %v477_v36 = vmax.f32 %v411_v48, 0.0 }
 0x169   :  { %v475_v45 = vmax.f32 %v405_v44, 0.0 }
 0x16a   :  { %734 = vmatmul.mubr.f32.gmra.mxu1 %v453_v54 }
 0x16b   :  { %739 = vmatprep.mubr.f32.mxu1 %v456_v51 }
 0x16e   :  { %740 = vmatmul.mubr.f32.gmra.mxu1 %v455_v58 }
 0x16f   :  { %745 = vmatprep.mubr.f32.mxu1 %v458_v56 }
 0x172   :  { %746 = vmatmul.mubr.f32.gmra.mxu1 %v457_v63 }
 0x173   :  { %751 = vmatprep.mubr.f32.mxu1 %v460_v62 }
 0x176   :  { %752 = vmatmul.mubr.f32.gmra.mxu1 %v459_v5 }
 0x177   :  { %757 = vmatprep.mubr.f32.mxu1 %v462_v2 }
 0x17a   :  { %758 = vmatmul.mubr.f32.gmra.mxu1 %v461_v15 }
 0x17b   :  { %763 = vmatprep.mubr.f32.mxu1 %v464_v12 }
 0x17e   :  { %764 = vmatmul.mubr.f32.gmra.mxu1 %v463_v20 }
 0x17f   :  { %769 = vmatprep.mubr.f32.mxu1 %v466_v18 }
 0x182   :  { %770 = vmatmul.mubr.f32.gmra.mxu1 %v465_v26 }
 0x183   :  { %775 = vmatprep.mubr.f32.mxu1 %v468_v22 }
 0x186   :  { %776 = vmatmul.mubr.f32.gmra.mxu1 %v467_v31 }
 0x187   :  { %781 = vmatprep.mubr.f32.mxu1 %v470_v29 }
 0x18a   :  { %782 = vmatmul.mubr.f32.gmra.mxu1 %v469_v37 }
 0x18b   :  { %787 = vmatprep.mubr.f32.mxu1 %v472_v33 }
 0x18e   :  { %788 = vmatmul.mubr.f32.gmra.mxu1 %v471_v0 }
 0x18f   :  { %793 = vmatprep.mubr.f32.mxu1 %v474_v10 }
 0x192   :  { %794 = vmatmul.mubr.f32.gmra.mxu1 %v473_v43 }
 0x193   :  { %799 = vmatprep.mubr.f32.mxu1 %v476_v46 }
 0x196   :  { %800 = vmatmul.mubr.f32.gmra.mxu1 %v475_v45 }
 0x197   :  { %805 = vmatprep.mubr.f32.mxu1 %v478_v9 }
 0x19a   :  { %806 = vmatmul.mubr.f32.gmra.mxu1 %v477_v36 }
 0x1de   :  { %v621_v51 = vpop.f32.mrf.mxu1 }
 0x1df   :  { %v622_v52 = vadd.f32 %v621_v51, %v1878_v50 }
 0x1e0   :  { %v623_v54 = vpop.f32.mrf.mxu1 }
 0x1e1   :  { %v624_v7 = vadd.f32 %v623_v54, %v1881_v8  ;;  %v812_v56 = vmax.f32 %v622_v52, 0.0 }
 0x1e2   :  { %v627_v35 = vpop.f32.mrf.mxu1 }
 0x1e3   :  { %v813_v55 = vmax.f32 %v624_v7, 0.0  ;;  %v628_v57 = vadd.f32 %v627_v35, %v1878_v50 }
 0x1e4   :  { %v629_v58 = vpop.f32.mrf.mxu1 }
 0x1e5   :  { %v630_v60 = vadd.f32 %v629_v58, %v1881_v8  ;;  %1016 = vmatprep.mubr.f32.mxu0 %v813_v55  ;;  %v814_v59 = vmax.f32 %v628_v57, 0.0 }
 0x1e6   :  { %v633_v61 = vpop.f32.mrf.mxu1  ;;  %1017 = vmatmul.mubr.f32.vlgmr.msra.gmra.mxu0 %v812_v56 }
 0x1e7   :  { %v815_v62 = vmax.f32 %v630_v60, 0.0  ;;  %v634_v63 = vadd.f32 %v633_v61, %v1878_v50 }
 0x1e8   :  { %v635_v23 = vpop.f32.mrf.mxu1 }
 0x1e9   :  { %v636_v1 = vadd.f32 %v635_v23, %v1881_v8  ;;  %1022 = vmatprep.mubr.f32.mxu0 %v815_v62  ;;  %v816_v5 = vmax.f32 %v634_v63, 0.0 }
 0x1ea   :  { %v639_v2 = vpop.f32.mrf.mxu1  ;;  %1023 = vmatmul.mubr.f32.gmra.mxu0 %v814_v59 }
 0x1eb   :  { %v817_v28 = vmax.f32 %v636_v1, 0.0  ;;  %v640_v47 = vadd.f32 %v639_v2, %v1878_v50 }
 0x1ec   :  { %v641_v11 = vpop.f32.mrf.mxu1 }
 0x1ed   :  { %v642_v12 = vadd.f32 %v641_v11, %v1881_v8  ;;  %1028 = vmatprep.mubr.f32.mxu0 %v817_v28  ;;  %v818_v14 = vmax.f32 %v640_v47, 0.0 }
 0x1ee   :  { %v645_v53 = vpop.f32.mrf.mxu1  ;;  %1029 = vmatmul.mubr.f32.gmra.mxu0 %v816_v5 }
 0x1ef   :  { %v819_v15 = vmax.f32 %v642_v12, 0.0  ;;  %v646_v17 = vadd.f32 %v645_v53, %v1878_v50 }
 0x1f0   :  { %v647_v18 = vpop.f32.mrf.mxu1 }
 0x1f1   :  { %v648_v19 = vadd.f32 %v647_v18, %v1881_v8  ;;  %1034 = vmatprep.mubr.f32.mxu0 %v819_v15  ;;  %v820_v21 = vmax.f32 %v646_v17, 0.0 }
 0x1f2   :  { %v651_v20 = vpop.f32.mrf.mxu1  ;;  %1035 = vmatmul.mubr.f32.gmra.mxu0 %v818_v14 }
 0x1f3   :  { %v821_v40 = vmax.f32 %v648_v19, 0.0  ;;  %v652_v22 = vadd.f32 %v651_v20, %v1878_v50 }
 0x1f4   :  { %v653_v24 = vpop.f32.mrf.mxu1 }
 0x1f5   :  { %v654_v26 = vadd.f32 %v653_v24, %v1881_v8  ;;  %1040 = vmatprep.mubr.f32.mxu0 %v821_v40  ;;  %v822_v29 = vmax.f32 %v652_v22, 0.0 }
 0x1f6   :  { %v657_v3 = vpop.f32.mrf.mxu1  ;;  %1041 = vmatmul.mubr.f32.gmra.mxu0 %v820_v21 }
 0x1f7   :  { %v823_v27 = vmax.f32 %v654_v26, 0.0  ;;  %v658_v13 = vadd.f32 %v657_v3, %v1878_v50 }
 0x1f8   :  { %v659_v31 = vpop.f32.mrf.mxu1 }
 0x1f9   :  { %v660_v32 = vadd.f32 %v659_v31, %v1881_v8  ;;  %1046 = vmatprep.mubr.f32.mxu0 %v823_v27  ;;  %v824_v34 = vmax.f32 %v658_v13, 0.0 }
 0x1fa   :  { %v663_v30 = vpop.f32.mrf.mxu1  ;;  %1047 = vmatmul.mubr.f32.gmra.mxu0 %v822_v29 }
 0x1fb   :  { %v825_v33 = vmax.f32 %v660_v32, 0.0  ;;  %v664_v37 = vadd.f32 %v663_v30, %v1878_v50 }
 0x1fc   :  { %v665_v25 = vpop.f32.mrf.mxu1 }
 0x1fd   :  { %v666_v38 = vadd.f32 %v665_v25, %v1881_v8  ;;  %1052 = vmatprep.mubr.f32.mxu0 %v825_v33  ;;  %v826_v0 = vmax.f32 %v664_v37, 0.0 }
 0x1fe   :  { %v669_v10 = vpop.f32.mrf.mxu1  ;;  %1053 = vmatmul.mubr.f32.gmra.mxu0 %v824_v34 }
 0x1ff   :  { %v827_v39 = vmax.f32 %v666_v38, 0.0  ;;  %v670_v41 = vadd.f32 %v669_v10, %v1878_v50 }
 0x200   :  { %v671_v42 = vpop.f32.mrf.mxu1 }
 0x201   :  { %v672_v46 = vadd.f32 %v671_v42, %v1881_v8  ;;  %1058 = vmatprep.mubr.f32.mxu0 %v827_v39  ;;  %v828_v44 = vmax.f32 %v670_v41, 0.0 }
 0x202   :  { %v675_v16 = vpop.f32.mrf.mxu1  ;;  %1059 = vmatmul.mubr.f32.gmra.mxu0 %v826_v0 }
 0x203   :  { %v829_v43 = vmax.f32 %v672_v46, 0.0  ;;  %v676_v9 = vadd.f32 %v675_v16, %v1878_v50 }
 0x204   :  { %v677_v45 = vpop.f32.mrf.mxu1 }
 0x205   :  { %v678_v48 = vadd.f32 %v677_v45, %v1881_v8  ;;  %1064 = vmatprep.mubr.f32.mxu0 %v829_v43  ;;  %v830_v51 = vmax.f32 %v676_v9, 0.0 }
 0x206   :  { %v681_v36 = vpop.f32.mrf.mxu1  ;;  %1065 = vmatmul.mubr.f32.gmra.mxu0 %v828_v44 }
 0x207   :  { %v831_v49 = vmax.f32 %v678_v48, 0.0  ;;  %v682_v52 = vadd.f32 %v681_v36, %v1878_v50 }
 0x208   :  { %v683_v54 = vpop.f32.mrf.mxu1 }
 0x209   :  { %v684_v7 = vadd.f32 %v683_v54, %v1881_v8  ;;  %1070 = vmatprep.mubr.f32.mxu0 %v831_v49  ;;  %v832_v56 = vmax.f32 %v682_v52, 0.0 }
 0x20a   :  { %v687_v35 = vpop.f32.mrf.mxu1  ;;  %1071 = vmatmul.mubr.f32.gmra.mxu0 %v830_v51 }
 0x20b   :  { %v833_v55 = vmax.f32 %v684_v7, 0.0  ;;  %v688_v57 = vadd.f32 %v687_v35, %v1878_v50 }
 0x20c   :  { %v689_v58 = vpop.f32.mrf.mxu1 }
 0x20d   :  { %v690_v60 = vadd.f32 %v689_v58, %v1881_v8  ;;  %1076 = vmatprep.mubr.f32.mxu0 %v833_v55  ;;  %v834_v59 = vmax.f32 %v688_v57, 0.0 }
 0x20e   :  { %v693_v61 = vpop.f32.mrf.mxu1  ;;  %1077 = vmatmul.mubr.f32.gmra.mxu0 %v832_v56 }
 0x20f   :  { %v835_v62 = vmax.f32 %v690_v60, 0.0  ;;  %v694_v63 = vadd.f32 %v693_v61, %v1878_v50 }
 0x210   :  { %v695_v23 = vpop.f32.mrf.mxu1 }
 0x211   :  { %v696_v1 = vadd.f32 %v695_v23, %v1881_v8  ;;  %1082 = vmatprep.mubr.f32.mxu0 %v835_v62  ;;  %v836_v5 = vmax.f32 %v694_v63, 0.0 }
 0x212   :  { %v699_v2 = vpop.f32.mrf.mxu1  ;;  %1083 = vmatmul.mubr.f32.gmra.mxu0 %v834_v59 }
 0x213   :  { %v837_v28 = vmax.f32 %v696_v1, 0.0  ;;  %v700_v47 = vadd.f32 %v699_v2, %v1878_v50 }
 0x214   :  { %v701_v11 = vpop.f32.mrf.mxu1 }
 0x215   :  { %v702_v12 = vadd.f32 %v701_v11, %v1881_v8  ;;  %1088 = vmatprep.mubr.f32.mxu0 %v837_v28  ;;  %v838_v14 = vmax.f32 %v700_v47, 0.0 }
 0x216   :  { %v705_v53 = vpop.f32.mrf.mxu1  ;;  %1089 = vmatmul.mubr.f32.gmra.mxu0 %v836_v5 }
 0x217   :  { %v839_v15 = vmax.f32 %v702_v12, 0.0  ;;  %v706_v17 = vadd.f32 %v705_v53, %v1878_v50 }
 0x218   :  { %v707_v18 = vpop.f32.mrf.mxu1 }
 0x219   :  { %v708_v19 = vadd.f32 %v707_v18, %v1881_v8  ;;  %1094 = vmatprep.mubr.f32.mxu0 %v839_v15  ;;  %v840_v21 = vmax.f32 %v706_v17, 0.0 }
 0x21a   :  { %v711_v20 = vpop.f32.mrf.mxu1  ;;  %1095 = vmatmul.mubr.f32.gmra.mxu0 %v838_v14 }
 0x21b   :  { %v841_v40 = vmax.f32 %v708_v19, 0.0  ;;  %v712_v22 = vadd.f32 %v711_v20, %v1878_v50 }
 0x21c   :  { %v713_v24 = vpop.f32.mrf.mxu1 }
 0x21d   :  { %v714_v26 = vadd.f32 %v713_v24, %v1881_v8  ;;  %1100 = vmatprep.mubr.f32.mxu0 %v841_v40  ;;  %v842_v29 = vmax.f32 %v712_v22, 0.0 }
 0x21e   :  { %v717_v3 = vpop.f32.mrf.mxu1  ;;  %1101 = vmatmul.mubr.f32.gmra.mxu0 %v840_v21 }
 0x21f   :  { %v843_v27 = vmax.f32 %v714_v26, 0.0  ;;  %v718_v13 = vadd.f32 %v717_v3, %v1878_v50 }
 0x220   :  { %v719_v31 = vpop.f32.mrf.mxu1 }
 0x221   :  { %v720_v32 = vadd.f32 %v719_v31, %v1881_v8  ;;  %1106 = vmatprep.mubr.f32.mxu0 %v843_v27  ;;  %v844_v34 = vmax.f32 %v718_v13, 0.0 }
 0x222   :  { %v723_v30 = vpop.f32.mrf.mxu1  ;;  %1107 = vmatmul.mubr.f32.gmra.mxu0 %v842_v29 }
 0x223   :  { %v845_v33 = vmax.f32 %v720_v32, 0.0  ;;  %v724_v37 = vadd.f32 %v723_v30, %v1878_v50 }
 0x224   :  { %v725_v25 = vpop.f32.mrf.mxu1 }
 0x225   :  { %v726_v38 = vadd.f32 %v725_v25, %v1881_v8  ;;  %1112 = vmatprep.mubr.f32.mxu0 %v845_v33  ;;  %v846_v0 = vmax.f32 %v724_v37, 0.0 }
 0x226   :  { %v729_v10 = vpop.f32.mrf.mxu1  ;;  %1113 = vmatmul.mubr.f32.gmra.mxu0 %v844_v34 }
 0x227   :  { %v847_v39 = vmax.f32 %v726_v38, 0.0  ;;  %v730_v41 = vadd.f32 %v729_v10, %v1878_v50 }
 0x228   :  { %v731_v42 = vpop.f32.mrf.mxu1 }
 0x229   :  { %v732_v46 = vadd.f32 %v731_v42, %v1881_v8  ;;  %1118 = vmatprep.mubr.f32.mxu0 %v847_v39  ;;  %v848_v44 = vmax.f32 %v730_v41, 0.0 }
 0x22a   :  { %v735_v16 = vpop.f32.mrf.mxu1  ;;  %1119 = vmatmul.mubr.f32.gmra.mxu0 %v846_v0 }
 0x22b   :  { %v849_v43 = vmax.f32 %v732_v46, 0.0  ;;  %v736_v9 = vadd.f32 %v735_v16, %v1878_v50 }
 0x22c   :  { %v737_v45 = vpop.f32.mrf.mxu1 }
 0x22d   :  { %v738_v48 = vadd.f32 %v737_v45, %v1881_v8  ;;  %1124 = vmatprep.mubr.f32.mxu0 %v849_v43  ;;  %v850_v51 = vmax.f32 %v736_v9, 0.0 }
 0x22e   :  { %v741_v36 = vpop.f32.mrf.mxu1  ;;  %1125 = vmatmul.mubr.f32.gmra.mxu0 %v848_v44 }
 0x22f   :  { %v851_v49 = vmax.f32 %v738_v48, 0.0  ;;  %v742_v52 = vadd.f32 %v741_v36, %v1878_v50 }
 0x230   :  { %v743_v54 = vpop.f32.mrf.mxu1 }
 0x231   :  { %v744_v7 = vadd.f32 %v743_v54, %v1881_v8  ;;  %1130 = vmatprep.mubr.f32.mxu0 %v851_v49  ;;  %v852_v56 = vmax.f32 %v742_v52, 0.0 }
 0x232   :  { %v747_v35 = vpop.f32.mrf.mxu1  ;;  %1131 = vmatmul.mubr.f32.gmra.mxu0 %v850_v51 }
 0x233   :  { %v853_v55 = vmax.f32 %v744_v7, 0.0  ;;  %v748_v57 = vadd.f32 %v747_v35, %v1878_v50 }
 0x234   :  { %v749_v58 = vpop.f32.mrf.mxu1 }
 0x235   :  { %v750_v60 = vadd.f32 %v749_v58, %v1881_v8  ;;  %1136 = vmatprep.mubr.f32.mxu0 %v853_v55  ;;  %v854_v59 = vmax.f32 %v748_v57, 0.0 }
 0x236   :  { %v753_v61 = vpop.f32.mrf.mxu1  ;;  %1137 = vmatmul.mubr.f32.gmra.mxu0 %v852_v56 }
 0x237   :  { %v855_v62 = vmax.f32 %v750_v60, 0.0  ;;  %v754_v63 = vadd.f32 %v753_v61, %v1878_v50 }
 0x238   :  { %v755_v23 = vpop.f32.mrf.mxu1 }
 0x239   :  { %v756_v1 = vadd.f32 %v755_v23, %v1881_v8  ;;  %1142 = vmatprep.mubr.f32.mxu0 %v855_v62  ;;  %v856_v5 = vmax.f32 %v754_v63, 0.0 }
 0x23a   :  { %v759_v2 = vpop.f32.mrf.mxu1  ;;  %1143 = vmatmul.mubr.f32.gmra.mxu0 %v854_v59  ;;  %v940_v59 = vld [vmem:[%s2032_s6] sm:$0x3]  ;;  %s1643_s6 = smov [#allocation10]  }
 0x23b   :  { %v857_v28 = vmax.f32 %v756_v1, 0.0  ;;  %v760_v47 = vadd.f32 %v759_v2, %v1878_v50  ;;  %v1951_v63 = vrot.slane %v940_v59, %v1737_v4  ;;  %v1954_v23 = vrot.slane %v940_v59, %v1742_v6  ;;  %s1342_s25 = sshll.u32 %s1643_s6, 4  ;;  %s1343_s25 = int_to_ptr.vmem [resolvable:$true] %s1342_s25 }
 0x23c   :  { %v761_v11 = vpop.f32.mrf.mxu1  ;;  %s1606_s26 = scalar_lea.vmem %s1343_s25, 8192  ;;  %p1611_p7 = scmp.lt.s32.totalorder %s1343_s25, %s1343_s25 }
 0x23d   :  { %v762_v12 = vadd.f32 %v761_v11, %v1881_v8  ;;  %1148 = vmatprep.mubr.f32.mxu0 %v857_v28  ;;  %v858_v14 = vmax.f32 %v760_v47, 0.0  ;;  %p1607_p6 = scmp.ne.s32.totalorder %s1343_s25, %s1606_s26  ;;  %p1612_p8 = scmp.lt.s32.totalorder %s1606_s26, %s1606_s26 }
 0x23e   :  { %v765_v53 = vpop.f32.mrf.mxu1  ;;  %1149 = vmatmul.mubr.f32.gmra.mxu0 %v856_v5 }
 0x23f   :  { %v859_v15 = vmax.f32 %v762_v12, 0.0  ;;  %v766_v17 = vadd.f32 %v765_v53, %v1878_v50  ;;  %p1613_p9 = por %p1612_p8, %p1611_p7 }
 0x240   :  { %v767_v18 = vpop.f32.mrf.mxu1 }
 0x241   :  { %v768_v19 = vadd.f32 %v767_v18, %v1881_v8  ;;  %1154 = vmatprep.mubr.f32.mxu0 %v859_v15  ;;  %v860_v21 = vmax.f32 %v766_v17, 0.0  ;;  %p1614_p10 = pnand %p1613_p9, %p1607_p6 }
 0x242   :  { %v771_v20 = vpop.f32.mrf.mxu1  ;;  %1155 = vmatmul.mubr.f32.gmra.mxu0 %v858_v14 }
 0x243   :  { %v861_v40 = vmax.f32 %v768_v19, 0.0  ;;  %v772_v22 = vadd.f32 %v771_v20, %v1878_v50 }
 0x244   :  { %v773_v24 = vpop.f32.mrf.mxu1 }
 0x245   :  { %v774_v26 = vadd.f32 %v773_v24, %v1881_v8  ;;  %1160 = vmatprep.mubr.f32.mxu0 %v861_v40  ;;  %v862_v29 = vmax.f32 %v772_v22, 0.0 }
 0x246   :  { %v777_v3 = vpop.f32.mrf.mxu1  ;;  %1161 = vmatmul.mubr.f32.gmra.mxu0 %v860_v21 }
 0x247   :  { %v863_v27 = vmax.f32 %v774_v26, 0.0  ;;  %v778_v13 = vadd.f32 %v777_v3, %v1878_v50 }
 0x248   :  { %v779_v31 = vpop.f32.mrf.mxu1 }
 0x249   :  { %v780_v32 = vadd.f32 %v779_v31, %v1881_v8  ;;  %1166 = vmatprep.mubr.f32.mxu0 %v863_v27  ;;  %v864_v34 = vmax.f32 %v778_v13, 0.0 }
 0x24a   :  { %v783_v30 = vpop.f32.mrf.mxu1  ;;  %1167 = vmatmul.mubr.f32.gmra.mxu0 %v862_v29 }
 0x24b   :  { %v865_v33 = vmax.f32 %v780_v32, 0.0  ;;  %v784_v37 = vadd.f32 %v783_v30, %v1878_v50 }
 0x24c   :  { %v785_v25 = vpop.f32.mrf.mxu1 }
 0x24d   :  { %v786_v38 = vadd.f32 %v785_v25, %v1881_v8  ;;  %1172 = vmatprep.mubr.f32.mxu0 %v865_v33  ;;  %v866_v0 = vmax.f32 %v784_v37, 0.0 }
 0x24e   :  { %v789_v10 = vpop.f32.mrf.mxu1  ;;  %1173 = vmatmul.mubr.f32.gmra.mxu0 %v864_v34 }
 0x24f   :  { %v867_v39 = vmax.f32 %v786_v38, 0.0  ;;  %v790_v41 = vadd.f32 %v789_v10, %v1878_v50 }
 0x250   :  { %v791_v42 = vpop.f32.mrf.mxu1 }
 0x251   :  { %v792_v46 = vadd.f32 %v791_v42, %v1881_v8  ;;  %1178 = vmatprep.mubr.f32.mxu0 %v867_v39  ;;  %v868_v44 = vmax.f32 %v790_v41, 0.0 }
 0x252   :  { %v795_v16 = vpop.f32.mrf.mxu1  ;;  %1179 = vmatmul.mubr.f32.gmra.mxu0 %v866_v0 }
 0x253   :  { %v869_v43 = vmax.f32 %v792_v46, 0.0  ;;  %v796_v9 = vadd.f32 %v795_v16, %v1878_v50 }
 0x254   :  { %v797_v45 = vpop.f32.mrf.mxu1 }
 0x255   :  { %v798_v48 = vadd.f32 %v797_v45, %v1881_v8  ;;  %1184 = vmatprep.mubr.f32.mxu0 %v869_v43  ;;  %v870_v51 = vmax.f32 %v796_v9, 0.0 }
 0x256   :  { %v801_v36 = vpop.f32.mrf.mxu1  ;;  %1185 = vmatmul.mubr.f32.gmra.mxu0 %v868_v44 }
 0x257   :  { %v871_v49 = vmax.f32 %v798_v48, 0.0  ;;  %v802_v52 = vadd.f32 %v801_v36, %v1878_v50 }
 0x258   :  { %v803_v54 = vpop.f32.mrf.mxu1 }
 0x259   :  { %v804_v7 = vadd.f32 %v803_v54, %v1881_v8  ;;  %1190 = vmatprep.mubr.f32.mxu0 %v871_v49  ;;  %v872_v56 = vmax.f32 %v802_v52, 0.0 }
 0x25a   :  { %v807_v35 = vpop.f32.mrf.mxu1  ;;  %1191 = vmatmul.mubr.f32.gmra.mxu0 %v870_v51 }
 0x25b   :  { %v873_v55 = vmax.f32 %v804_v7, 0.0  ;;  %v808_v57 = vadd.f32 %v807_v35, %v1878_v50 }
 0x25c   :  { %v809_v58 = vpop.f32.mrf.mxu1 }
 0x25d   :  { %v810_v60 = vadd.f32 %v809_v58, %v1881_v8  ;;  %1196 = vmatprep.mubr.f32.mxu0 %v873_v55  ;;  %v874_v62 = vmax.f32 %v808_v57, 0.0 }
 0x25e   :  { %1197 = vmatmul.mubr.f32.gmra.mxu0 %v872_v56 }
 0x25f   :  { %v875_v61 = vmax.f32 %v810_v60, 0.0 }
 0x261   :  { %1202 = vmatprep.mubr.f32.mxu0 %v875_v61 }
 0x262   :  { %1203 = vmatmul.mubr.f32.gmra.mxu0 %v874_v62 }
 0x2a6   :  { %v1018_v50 = vpop.f32.mrf.mxu0 }
 0x2a7   :  { %v1019_v1 = vadd.f32 %v1018_v50, %v1951_v63 }
 0x2a8   :  { %v1020_v8 = vpop.f32.mrf.mxu0 }
 0x2a9   :  { %1398 = vtanh.f32 %v1019_v1  ;;  %v1021_v2 = vadd.f32 %v1020_v8, %v1954_v23 }
 0x2aa   :  { %v1024_v28 = vpop.f32.mrf.mxu0 }
 0x2ab   :  { %1400 = vtanh.f32 %v1021_v2  ;;  %v1025_v5 = vadd.f32 %v1024_v28, %v1951_v63 }
 0x2ac   :  { %v1026_v47 = vpop.f32.mrf.mxu0 }
 0x2ad   :  { %1402 = vtanh.f32 %v1025_v5  ;;  %v1027_v11 = vadd.f32 %v1026_v47, %v1954_v23 }
 0x2ae   :  { %v1030_v4 = vpop.f32.mrf.mxu0 }
 0x2af   :  { %1404 = vtanh.f32 %v1027_v11  ;;  %v1031_v6 = vadd.f32 %v1030_v4, %v1951_v63 }
 0x2b0   :  { %v1032_v12 = vpop.f32.mrf.mxu0 }
 0x2b1   :  { %1406 = vtanh.f32 %v1031_v6  ;;  %v1033_v53 = vadd.f32 %v1032_v12, %v1954_v23 }
 0x2b2   :  { %v1036_v15 = vpop.f32.mrf.mxu0 }
 0x2b3   :  { %1408 = vtanh.f32 %v1033_v53  ;;  %v1037_v14 = vadd.f32 %v1036_v15, %v1951_v63 }
 0x2b4   :  { %v1038_v17 = vpop.f32.mrf.mxu0 }
 0x2b5   :  { %1410 = vtanh.f32 %v1037_v14  ;;  %v1039_v18 = vadd.f32 %v1038_v17, %v1954_v23 }
 0x2b6   :  { %v1399_v19 = vpop.eup %1398  ;;  %v1042_v20 = vpop.f32.mrf.mxu0 }
 0x2b7   :  { %1273 = vst [vmem:[#allocation10] sm:$0xff] %v1399_v19  ;;  %1412 = vtanh.f32 %v1039_v18  ;;  %v1043_v40 = vadd.f32 %v1042_v20, %v1951_v63 }
 0x2b8   :  { %v1401_v21 = vpop.eup %1400  ;;  %v1044_v22 = vpop.f32.mrf.mxu0 }
 0x2b9   :  { %1274 = vst [vmem:[#allocation10 + $0x8] sm:$0xff] %v1401_v21  ;;  %1414 = vtanh.f32 %v1043_v40  ;;  %v1045_v24 = vadd.f32 %v1044_v22, %v1954_v23 }
 0x2ba   :  { %v1403_v26 = vpop.eup %1402  ;;  %v1048_v3 = vpop.f32.mrf.mxu0 }
 0x2bb   :  { %1275 = vst [vmem:[#allocation10 + $0x10] sm:$0xff] %v1403_v26  ;;  %1416 = vtanh.f32 %v1045_v24  ;;  %v1049_v27 = vadd.f32 %v1048_v3, %v1951_v63 }
 0x2bc   :  { %v1405_v29 = vpop.eup %1404  ;;  %v1050_v13 = vpop.f32.mrf.mxu0 }
 0x2bd   :  { %1276 = vst [vmem:[#allocation10 + $0x18] sm:$0xff] %v1405_v29  ;;  %1418 = vtanh.f32 %v1049_v27  ;;  %v1051_v31 = vadd.f32 %v1050_v13, %v1954_v23 }
 0x2be   :  { %v1407_v32 = vpop.eup %1406  ;;  %v1054_v30 = vpop.f32.mrf.mxu0 }
 0x2bf   :  { %1277 = vst [vmem:[#allocation10 + $0x20] sm:$0xff] %v1407_v32  ;;  %1420 = vtanh.f32 %v1051_v31  ;;  %v1055_v33 = vadd.f32 %v1054_v30, %v1951_v63 }
 0x2c0   :  { %v1409_v34 = vpop.eup %1408  ;;  %v1056_v37 = vpop.f32.mrf.mxu0 }
 0x2c1   :  { %1278 = vst [vmem:[#allocation10 + $0x28] sm:$0xff] %v1409_v34  ;;  %1422 = vtanh.f32 %v1055_v33  ;;  %v1057_v25 = vadd.f32 %v1056_v37, %v1954_v23 }
 0x2c2   :  { %v1411_v38 = vpop.eup %1410  ;;  %v1060_v10 = vpop.f32.mrf.mxu0 }
 0x2c3   :  { %1279 = vst [vmem:[#allocation10 + $0x30] sm:$0xff] %v1411_v38  ;;  %1424 = vtanh.f32 %v1057_v25  ;;  %v1061_v39 = vadd.f32 %v1060_v10, %v1951_v63 }
 0x2c4   :  { %v1413_v0 = vpop.eup %1412  ;;  %v1062_v41 = vpop.f32.mrf.mxu0 }
 0x2c5   :  { %1280 = vst [vmem:[#allocation10 + $0x38] sm:$0xff] %v1413_v0  ;;  %1426 = vtanh.f32 %v1061_v39  ;;  %v1063_v42 = vadd.f32 %v1062_v41, %v1954_v23 }
 0x2c6   :  { %v1415_v46 = vpop.eup %1414  ;;  %v1066_v16 = vpop.f32.mrf.mxu0 }
 0x2c7   :  { %1281 = vst [vmem:[#allocation10 + $0x40] sm:$0xff] %v1415_v46  ;;  %1428 = vtanh.f32 %v1063_v42  ;;  %v1067_v43 = vadd.f32 %v1066_v16, %v1951_v63 }
 0x2c8   :  { %v1417_v44 = vpop.eup %1416  ;;  %v1068_v9 = vpop.f32.mrf.mxu0 }
 0x2c9   :  { %1282 = vst [vmem:[#allocation10 + $0x48] sm:$0xff] %v1417_v44  ;;  %1430 = vtanh.f32 %v1067_v43  ;;  %v1069_v45 = vadd.f32 %v1068_v9, %v1954_v23 }
 0x2ca   :  { %v1419_v48 = vpop.eup %1418  ;;  %v1072_v36 = vpop.f32.mrf.mxu0 }
 0x2cb   :  { %1283 = vst [vmem:[#allocation10 + $0x50] sm:$0xff] %v1419_v48  ;;  %1432 = vtanh.f32 %v1069_v45  ;;  %v1073_v49 = vadd.f32 %v1072_v36, %v1951_v63 }
 0x2cc   :  { %v1421_v51 = vpop.eup %1420  ;;  %v1074_v52 = vpop.f32.mrf.mxu0 }
 0x2cd   :  { %1284 = vst [vmem:[#allocation10 + $0x58] sm:$0xff] %v1421_v51  ;;  %1434 = vtanh.f32 %v1073_v49  ;;  %v1075_v54 = vadd.f32 %v1074_v52, %v1954_v23 }
 0x2ce   :  { %v1423_v7 = vpop.eup %1422  ;;  %v1078_v35 = vpop.f32.mrf.mxu0 }
 0x2cf   :  { %1285 = vst [vmem:[#allocation10 + $0x60] sm:$0xff] %v1423_v7  ;;  %1436 = vtanh.f32 %v1075_v54  ;;  %v1079_v55 = vadd.f32 %v1078_v35, %v1951_v63 }
 0x2d0   :  { %v1425_v56 = vpop.eup %1424  ;;  %v1080_v57 = vpop.f32.mrf.mxu0 }
 0x2d1   :  { %1286 = vst [vmem:[#allocation10 + $0x68] sm:$0xff] %v1425_v56  ;;  %1438 = vtanh.f32 %v1079_v55  ;;  %v1081_v58 = vadd.f32 %v1080_v57, %v1954_v23 }
 0x2d2   :  { %v1427_v60 = vpop.eup %1426  ;;  %v1084_v61 = vpop.f32.mrf.mxu0 }
 0x2d3   :  { %1287 = vst [vmem:[#allocation10 + $0x70] sm:$0xff] %v1427_v60  ;;  %1440 = vtanh.f32 %v1081_v58  ;;  %v1085_v62 = vadd.f32 %v1084_v61, %v1951_v63 }
 0x2d4   :  { %v1429_v59 = vpop.eup %1428  ;;  %v1086_v50 = vpop.f32.mrf.mxu0 }
 0x2d5   :  { %1288 = vst [vmem:[#allocation10 + $0x78] sm:$0xff] %v1429_v59  ;;  %1442 = vtanh.f32 %v1085_v62  ;;  %v1087_v1 = vadd.f32 %v1086_v50, %v1954_v23 }
 0x2d6   :  { %v1431_v8 = vpop.eup %1430  ;;  %v1090_v2 = vpop.f32.mrf.mxu0 }
 0x2d7   :  { %1289 = vst [vmem:[#allocation10 + $0x80] sm:$0xff] %v1431_v8  ;;  %1444 = vtanh.f32 %v1087_v1  ;;  %v1091_v28 = vadd.f32 %v1090_v2, %v1951_v63 }
 0x2d8   :  { %v1433_v5 = vpop.eup %1432  ;;  %v1092_v47 = vpop.f32.mrf.mxu0 }
 0x2d9   :  { %1290 = vst [vmem:[#allocation10 + $0x88] sm:$0xff] %v1433_v5  ;;  %1446 = vtanh.f32 %v1091_v28  ;;  %v1093_v11 = vadd.f32 %v1092_v47, %v1954_v23 }
 0x2da   :  { %v1435_v4 = vpop.eup %1434  ;;  %v1096_v6 = vpop.f32.mrf.mxu0 }
 0x2db   :  { %1291 = vst [vmem:[#allocation10 + $0x90] sm:$0xff] %v1435_v4  ;;  %1448 = vtanh.f32 %v1093_v11  ;;  %v1097_v12 = vadd.f32 %v1096_v6, %v1951_v63 }
 0x2dc   :  { %v1437_v53 = vpop.eup %1436  ;;  %v1098_v15 = vpop.f32.mrf.mxu0 }
 0x2dd   :  { %1292 = vst [vmem:[#allocation10 + $0x98] sm:$0xff] %v1437_v53  ;;  %1450 = vtanh.f32 %v1097_v12  ;;  %v1099_v14 = vadd.f32 %v1098_v15, %v1954_v23 }
 0x2de   :  { %v1439_v17 = vpop.eup %1438  ;;  %v1102_v18 = vpop.f32.mrf.mxu0 }
 0x2df   :  { %1293 = vst [vmem:[#allocation10 + $0xa0] sm:$0xff] %v1439_v17  ;;  %1452 = vtanh.f32 %v1099_v14  ;;  %v1103_v19 = vadd.f32 %v1102_v18, %v1951_v63 }
 0x2e0   :  { %v1441_v20 = vpop.eup %1440  ;;  %v1104_v40 = vpop.f32.mrf.mxu0 }
 0x2e1   :  { %1294 = vst [vmem:[#allocation10 + $0xa8] sm:$0xff] %v1441_v20  ;;  %1454 = vtanh.f32 %v1103_v19  ;;  %v1105_v21 = vadd.f32 %v1104_v40, %v1954_v23 }
 0x2e2   :  { %v1443_v22 = vpop.eup %1442  ;;  %v1108_v24 = vpop.f32.mrf.mxu0 }
 0x2e3   :  { %1295 = vst [vmem:[#allocation10 + $0xb0] sm:$0xff] %v1443_v22  ;;  %1456 = vtanh.f32 %v1105_v21  ;;  %v1109_v26 = vadd.f32 %v1108_v24, %v1951_v63 }
 0x2e4   :  { %v1445_v3 = vpop.eup %1444  ;;  %v1110_v27 = vpop.f32.mrf.mxu0 }
 0x2e5   :  { %1296 = vst [vmem:[#allocation10 + $0xb8] sm:$0xff] %v1445_v3  ;;  %1458 = vtanh.f32 %v1109_v26  ;;  %v1111_v29 = vadd.f32 %v1110_v27, %v1954_v23 }
 0x2e6   :  { %v1447_v13 = vpop.eup %1446  ;;  %v1114_v31 = vpop.f32.mrf.mxu0 }
 0x2e7   :  { %1297 = vst [vmem:[#allocation10 + $0xc0] sm:$0xff] %v1447_v13  ;;  %1460 = vtanh.f32 %v1111_v29  ;;  %v1115_v32 = vadd.f32 %v1114_v31, %v1951_v63 }
 0x2e8   :  { %v1449_v30 = vpop.eup %1448  ;;  %v1116_v33 = vpop.f32.mrf.mxu0 }
 0x2e9   :  { %1298 = vst [vmem:[#allocation10 + $0xc8] sm:$0xff] %v1449_v30  ;;  %1462 = vtanh.f32 %v1115_v32  ;;  %v1117_v34 = vadd.f32 %v1116_v33, %v1954_v23 }
 0x2ea   :  { %v1451_v37 = vpop.eup %1450  ;;  %v1120_v25 = vpop.f32.mrf.mxu0 }
 0x2eb   :  { %1299 = vst [vmem:[#allocation10 + $0xd0] sm:$0xff] %v1451_v37  ;;  %1464 = vtanh.f32 %v1117_v34  ;;  %v1121_v38 = vadd.f32 %v1120_v25, %v1951_v63 }
 0x2ec   :  { %v1453_v10 = vpop.eup %1452  ;;  %v1122_v39 = vpop.f32.mrf.mxu0 }
 0x2ed   :  { %1300 = vst [vmem:[#allocation10 + $0xd8] sm:$0xff] %v1453_v10  ;;  %1466 = vtanh.f32 %v1121_v38  ;;  %v1123_v0 = vadd.f32 %v1122_v39, %v1954_v23 }
 0x2ee   :  { %v1455_v41 = vpop.eup %1454  ;;  %v1126_v42 = vpop.f32.mrf.mxu0 }
 0x2ef   :  { %1301 = vst [vmem:[#allocation10 + $0xe0] sm:$0xff] %v1455_v41  ;;  %1468 = vtanh.f32 %v1123_v0  ;;  %v1127_v46 = vadd.f32 %v1126_v42, %v1951_v63 }
 0x2f0   :  { %v1457_v16 = vpop.eup %1456  ;;  %v1128_v43 = vpop.f32.mrf.mxu0 }
 0x2f1   :  { %1302 = vst [vmem:[#allocation10 + $0xe8] sm:$0xff] %v1457_v16  ;;  %1470 = vtanh.f32 %v1127_v46  ;;  %v1129_v44 = vadd.f32 %v1128_v43, %v1954_v23 }
 0x2f2   :  { %v1459_v9 = vpop.eup %1458  ;;  %v1132_v45 = vpop.f32.mrf.mxu0 }
 0x2f3   :  { %1303 = vst [vmem:[#allocation10 + $0xf0] sm:$0xff] %v1459_v9  ;;  %1472 = vtanh.f32 %v1129_v44  ;;  %v1133_v48 = vadd.f32 %v1132_v45, %v1951_v63 }
 0x2f4   :  { %v1461_v36 = vpop.eup %1460  ;;  %v1134_v49 = vpop.f32.mrf.mxu0 }
 0x2f5   :  { %1304 = vst [vmem:[#allocation10 + $0xf8] sm:$0xff] %v1461_v36  ;;  %1474 = vtanh.f32 %v1133_v48  ;;  %v1135_v51 = vadd.f32 %v1134_v49, %v1954_v23 }
 0x2f6   :  { %v1463_v52 = vpop.eup %1462  ;;  %v1138_v54 = vpop.f32.mrf.mxu0 }
 0x2f7   :  { %1305 = vst [vmem:[#allocation10 + $0x100] sm:$0xff] %v1463_v52  ;;  %1476 = vtanh.f32 %v1135_v51  ;;  %v1139_v7 = vadd.f32 %v1138_v54, %v1951_v63 }
 0x2f8   :  { %v1465_v35 = vpop.eup %1464  ;;  %v1140_v55 = vpop.f32.mrf.mxu0 }
 0x2f9   :  { %1306 = vst [vmem:[#allocation10 + $0x108] sm:$0xff] %v1465_v35  ;;  %1478 = vtanh.f32 %v1139_v7  ;;  %v1141_v56 = vadd.f32 %v1140_v55, %v1954_v23 }
 0x2fa   :  { %v1467_v57 = vpop.eup %1466  ;;  %v1144_v58 = vpop.f32.mrf.mxu0 }
 0x2fb   :  { %1307 = vst [vmem:[#allocation10 + $0x110] sm:$0xff] %v1467_v57  ;;  %1480 = vtanh.f32 %v1141_v56  ;;  %v1145_v60 = vadd.f32 %v1144_v58, %v1951_v63 }
 0x2fc   :  { %v1469_v61 = vpop.eup %1468  ;;  %v1146_v62 = vpop.f32.mrf.mxu0 }
 0x2fd   :  { %1308 = vst [vmem:[#allocation10 + $0x118] sm:$0xff] %v1469_v61  ;;  %1482 = vtanh.f32 %v1145_v60  ;;  %v1147_v59 = vadd.f32 %v1146_v62, %v1954_v23 }
 0x2fe   :  { %v1471_v50 = vpop.eup %1470  ;;  %v1150_v1 = vpop.f32.mrf.mxu0 }
 0x2ff   :  { %1309 = vst [vmem:[#allocation10 + $0x120] sm:$0xff] %v1471_v50  ;;  %1484 = vtanh.f32 %v1147_v59  ;;  %v1151_v8 = vadd.f32 %v1150_v1, %v1951_v63 }
 0x300   :  { %v1473_v2 = vpop.eup %1472  ;;  %v1152_v28 = vpop.f32.mrf.mxu0 }
 0x301   :  { %1310 = vst [vmem:[#allocation10 + $0x128] sm:$0xff] %v1473_v2  ;;  %1486 = vtanh.f32 %v1151_v8  ;;  %v1153_v5 = vadd.f32 %v1152_v28, %v1954_v23 }
 0x302   :  { %v1475_v47 = vpop.eup %1474  ;;  %v1156_v11 = vpop.f32.mrf.mxu0 }
 0x303   :  { %1311 = vst [vmem:[#allocation10 + $0x130] sm:$0xff] %v1475_v47  ;;  %1488 = vtanh.f32 %v1153_v5  ;;  %v1157_v4 = vadd.f32 %v1156_v11, %v1951_v63 }
 0x304   :  { %v1477_v6 = vpop.eup %1476  ;;  %v1158_v12 = vpop.f32.mrf.mxu0 }
 0x305   :  { %1312 = vst [vmem:[#allocation10 + $0x138] sm:$0xff] %v1477_v6  ;;  %1490 = vtanh.f32 %v1157_v4  ;;  %v1159_v53 = vadd.f32 %v1158_v12, %v1954_v23 }
 0x306   :  { %v1479_v15 = vpop.eup %1478  ;;  %v1162_v14 = vpop.f32.mrf.mxu0 }
 0x307   :  { %1313 = vst [vmem:[#allocation10 + $0x140] sm:$0xff] %v1479_v15  ;;  %1492 = vtanh.f32 %v1159_v53  ;;  %v1163_v17 = vadd.f32 %v1162_v14, %v1951_v63 }
 0x308   :  { %v1481_v18 = vpop.eup %1480  ;;  %v1164_v19 = vpop.f32.mrf.mxu0 }
 0x309   :  { %1314 = vst [vmem:[#allocation10 + $0x148] sm:$0xff] %v1481_v18  ;;  %1494 = vtanh.f32 %v1163_v17  ;;  %v1165_v20 = vadd.f32 %v1164_v19, %v1954_v23 }
 0x30a   :  { %v1483_v40 = vpop.eup %1482  ;;  %v1168_v21 = vpop.f32.mrf.mxu0 }
 0x30b   :  { %1315 = vst [vmem:[#allocation10 + $0x150] sm:$0xff] %v1483_v40  ;;  %1496 = vtanh.f32 %v1165_v20  ;;  %v1169_v22 = vadd.f32 %v1168_v21, %v1951_v63 }
 0x30c   :  { %v1485_v24 = vpop.eup %1484  ;;  %v1170_v26 = vpop.f32.mrf.mxu0 }
 0x30d   :  { %1316 = vst [vmem:[#allocation10 + $0x158] sm:$0xff] %v1485_v24  ;;  %1498 = vtanh.f32 %v1169_v22  ;;  %v1171_v3 = vadd.f32 %v1170_v26, %v1954_v23 }
 0x30e   :  { %v1487_v27 = vpop.eup %1486  ;;  %v1174_v29 = vpop.f32.mrf.mxu0 }
 0x30f   :  { %1317 = vst [vmem:[#allocation10 + $0x160] sm:$0xff] %v1487_v27  ;;  %1500 = vtanh.f32 %v1171_v3  ;;  %v1175_v13 = vadd.f32 %v1174_v29, %v1951_v63 }
 0x310   :  { %v1489_v31 = vpop.eup %1488  ;;  %v1176_v32 = vpop.f32.mrf.mxu0 }
 0x311   :  { %1318 = vst [vmem:[#allocation10 + $0x168] sm:$0xff] %v1489_v31  ;;  %1502 = vtanh.f32 %v1175_v13  ;;  %v1177_v30 = vadd.f32 %v1176_v32, %v1954_v23 }
 0x312   :  { %v1491_v33 = vpop.eup %1490  ;;  %v1180_v34 = vpop.f32.mrf.mxu0 }
 0x313   :  { %1319 = vst [vmem:[#allocation10 + $0x170] sm:$0xff] %v1491_v33  ;;  %1504 = vtanh.f32 %v1177_v30  ;;  %v1181_v37 = vadd.f32 %v1180_v34, %v1951_v63 }
 0x314   :  { %v1493_v25 = vpop.eup %1492  ;;  %v1182_v38 = vpop.f32.mrf.mxu0 }
 0x315   :  { %1320 = vst [vmem:[#allocation10 + $0x178] sm:$0xff] %v1493_v25  ;;  %1506 = vtanh.f32 %v1181_v37  ;;  %v1183_v10 = vadd.f32 %v1182_v38, %v1954_v23 }
 0x316   :  { %v1495_v39 = vpop.eup %1494  ;;  %v1186_v0 = vpop.f32.mrf.mxu0 }
 0x317   :  { %1321 = vst [vmem:[#allocation10 + $0x180] sm:$0xff] %v1495_v39  ;;  %1508 = vtanh.f32 %v1183_v10  ;;  %v1187_v41 = vadd.f32 %v1186_v0, %v1951_v63 }
 0x318   :  { %v1497_v42 = vpop.eup %1496  ;;  %v1188_v46 = vpop.f32.mrf.mxu0 }
 0x319   :  { %1322 = vst [vmem:[#allocation10 + $0x188] sm:$0xff] %v1497_v42  ;;  %1510 = vtanh.f32 %v1187_v41  ;;  %v1189_v16 = vadd.f32 %v1188_v46, %v1954_v23 }
 0x31a   :  { %v1499_v43 = vpop.eup %1498  ;;  %v1192_v44 = vpop.f32.mrf.mxu0 }
 0x31b   :  { %1323 = vst [vmem:[#allocation10 + $0x190] sm:$0xff] %v1499_v43  ;;  %1512 = vtanh.f32 %v1189_v16  ;;  %v1193_v9 = vadd.f32 %v1192_v44, %v1951_v63 }
 0x31c   :  { %v1501_v45 = vpop.eup %1500  ;;  %v1194_v48 = vpop.f32.mrf.mxu0 }
 0x31d   :  { %1324 = vst [vmem:[#allocation10 + $0x198] sm:$0xff] %v1501_v45  ;;  %1514 = vtanh.f32 %v1193_v9  ;;  %v1195_v36 = vadd.f32 %v1194_v48, %v1954_v23 }
 0x31e   :  { %v1503_v49 = vpop.eup %1502  ;;  %v1198_v51 = vpop.f32.mrf.mxu0 }
 0x31f   :  { %1325 = vst [vmem:[#allocation10 + $0x1a0] sm:$0xff] %v1503_v49  ;;  %1516 = vtanh.f32 %v1195_v36  ;;  %v1199_v52 = vadd.f32 %v1198_v51, %v1951_v63 }
 0x320   :  { %v1505_v54 = vpop.eup %1504  ;;  %v1200_v7 = vpop.f32.mrf.mxu0 }
 0x321   :  { %1326 = vst [vmem:[#allocation10 + $0x1a8] sm:$0xff] %v1505_v54  ;;  %1518 = vtanh.f32 %v1199_v52  ;;  %v1201_v35 = vadd.f32 %v1200_v7, %v1954_v23 }
 0x322   :  { %v1507_v55 = vpop.eup %1506  ;;  %v1204_v56 = vpop.f32.mrf.mxu0 }
 0x323   :  { %1327 = vst [vmem:[#allocation10 + $0x1b0] sm:$0xff] %v1507_v55  ;;  %1520 = vtanh.f32 %v1201_v35  ;;  %v1205_v57 = vadd.f32 %v1204_v56, %v1951_v63 }
 0x324   :  { %v1509_v58 = vpop.eup %1508  ;;  %v1206_v60 = vpop.f32.mrf.mxu0 }
 0x325   :  { %1328 = vst [vmem:[#allocation10 + $0x1b8] sm:$0xff] %v1509_v58  ;;  %1522 = vtanh.f32 %v1205_v57  ;;  %v1207_v61 = vadd.f32 %v1206_v60, %v1954_v23 }
 0x326   :  { %v1511_v62 = vpop.eup %1510 }
 0x327   :  { %1329 = vst [vmem:[#allocation10 + $0x1c0] sm:$0xff] %v1511_v62  ;;  %1524 = vtanh.f32 %v1207_v61 }
 0x328   :  { %v1513_v59 = vpop.eup %1512 }
 0x329   :  { %1330 = vst [vmem:[#allocation10 + $0x1c8] sm:$0xff] %v1513_v59 }
 0x32a   :  { %v1515_v50 = vpop.eup %1514 }
 0x32b   :  { %1331 = vst [vmem:[#allocation10 + $0x1d0] sm:$0xff] %v1515_v50 }
 0x32c   :  { %v1517_v1 = vpop.eup %1516 }
 0x32d   :  { %1332 = vst [vmem:[#allocation10 + $0x1d8] sm:$0xff] %v1517_v1 }
 0x32e   :  { %v1519_v8 = vpop.eup %1518 }
 0x32f   :  { %1333 = vst [vmem:[#allocation10 + $0x1e0] sm:$0xff] %v1519_v8 }
 0x330   :  { %v1521_v2 = vpop.eup %1520 }
 0x331   :  { %1334 = vst [vmem:[#allocation10 + $0x1e8] sm:$0xff] %v1521_v2 }
 0x332   :  { %v1523_v63 = vpop.eup %1522 }
 0x333   :  { %1335 = vst [vmem:[#allocation10 + $0x1f0] sm:$0xff] %v1523_v63 }
 0x334   :  { %v1525_v28 = vpop.eup %1524 }
 0x335   :  { %1336 = vst [vmem:[#allocation10 + $0x1f8] sm:$0xff] %v1525_v28 }
 0x336   :  { %1617 = shalt.err (!%p1614_p10)
}
 0x337   :  { %1348 = dma.vmem_to_hbm [thread:$0]  %s1343_s25, 8192, %s2033_s7, [#allocation4], %s1635_s27, %s1635_s27, %s1636_s28  }
 0x338   :  { %1632 = dma.done.wait [#allocation4], 8192  }
 0x339   :  { %1633 = vsyncadd [#allocation4], 4294959104 }
 0x33a   :  { %1352 = vsyncpa [#allocation3], 1 }
 0x33b   :  { %1353 = vsyncpa [#allocation6], 1 }
 0x33c   :  { %1354 = vsyncpa [#allocation9], 1 }
 0x33d   :  { %1355 = vsyncpa [#allocation4], 1 }

</bundles_post_ra>
